<compile_context>
chip_gen: v5e
topology: v5e:2x2
jax: 0.10.0
libtpu: 0.0.40
codegen_flags: <defaults>
</compile_context>

<pallas_src>
import functools

import numpy as np
import jax
import jax.numpy as jnp
from jax.experimental import pallas as pl
from jax.experimental.pallas import tpu as pltpu

NT_PAD = 128  # lane-dense padded output width; real n_tasks columns sliced outside


def _mtgcn_kernel(seg_off_ref, seg_cnt_ref,
                  a_ref, x_ref,
                  wblk1_ref, bblk1_ref, sc1_ref, sh1_ref,
                  wblk2_ref, bblk2_ref, sc2_ref, sh2_ref,
                  hf32_ref, hbf16_ref,
                  out_ref,
                  h2_s, wg_s, hg_s,
                  *, seg_size):
    """One task (one grid step): shared GCN -> weighted-sum-and-max readout -> MLP head."""
    f32 = jnp.float32
    bf16 = jnp.bfloat16

    h1 = sc1_ref.shape[1]
    h2 = h2_s.shape[1]
    p1 = hbf16_ref.shape[0] - 2 * h2
    n_graphs = seg_off_ref.shape[0]

    # int8 HBM storage (halves A bytes, the HBM-bound operand at realistic N); the
    # upcast to bf16 rides an otherwise idle VPU slot.
    a = a_ref[...].astype(bf16)                       # (N, N) adjacency (dst, src)
    x = x_ref[...]                                    # (N, F) bf16 node features

    # ---- shared GCN layer 1: relu(A@X@W1 + b1) + relu(X@Wr1 + br1) ; BN1 (running stats)
    # conv + residual fused into ONE block-diagonal matmul (K and output lanes doubled).
    agg1 = jnp.dot(a, x, preferred_element_type=f32)
    lhs1 = jnp.concatenate([agg1.astype(bf16), x], axis=-1)                  # (N, 2F)
    cr1 = jnp.dot(lhs1, wblk1_ref[...], preferred_element_type=f32) + bblk1_ref[...]
    cr1 = jnp.maximum(cr1, 0.0)                       # [relu(conv) | relu(res)] in one vreg row
    h1v = cr1[:, :h1] + cr1[:, h1:]                   # halves add (lane rotate on XLU + VPU add)
    # TODO(synk): GCN dropout is identity in inference mode (training dropout not emulated)
    h1v = h1v * sc1_ref[...] + sh1_ref[...]           # f32 VPU path (v5e-safe)
    h1b = h1v.astype(bf16)                            # cast only at MXU operand boundaries

    # ---- shared GCN layer 2 (same fusion) ----
    agg2 = jnp.dot(a, h1b, preferred_element_type=f32)
    lhs2 = jnp.concatenate([agg2.astype(bf16), h1b], axis=-1)                # (N, 2*H1)
    cr2 = jnp.dot(lhs2, wblk2_ref[...], preferred_element_type=f32) + bblk2_ref[...]
    cr2 = jnp.maximum(cr2, 0.0)
    h2v = cr2[:, :h2] + cr2[:, h2:]
    h2v = h2v * sc2_ref[...] + sh2_ref[...]           # (N, H2) f32

    # ---- WeightedSumAndMax readout via contiguous segment reductions ----
    ww = hf32_ref[0:1, 0:h2]                          # atom-gate weight row      (1, H2)
    bw = hf32_ref[1:2, 0:1]                           # atom-gate bias            (1, 1)
    w_atom = jax.nn.sigmoid(jnp.sum(h2v * ww, axis=-1, keepdims=True) + bw)  # (N, 1)
    h2_s[...] = h2v                                   # only h2 + the (N,1) gate hit VMEM
    wg_s[...] = w_atom
    hg_s[...] = jnp.zeros_like(hg_s)                  # (G_pad, 2*H2) row accumulator

    node_idx = jax.lax.broadcasted_iota(jnp.int32, (seg_size, h2), 0)
    for g in range(n_graphs):                         # static unroll, direct row writes
        # contiguous segments, host-asserted to be 8-aligned and inside the node buffer
        start = pl.multiple_of(seg_off_ref[g], 8)
        cnt = seg_cnt_ref[g]
        valid = node_idx < cnt
        hseg = h2_s[pl.ds(start, seg_size), :]        # (seg_size, H2)
        gseg = wg_s[pl.ds(start, seg_size), :]        # (seg_size, 1)
        srow = jnp.sum(jnp.where(valid, gseg * hseg, 0.0), axis=0, keepdims=True)
        # TODO(synk): an empty segment yields -1e30 here; DGL batched graphs are never empty
        mrow = jnp.max(jnp.where(valid, hseg, -1e30), axis=0, keepdims=True)
        hg_s[g:g + 1, :] = jnp.concatenate([srow, mrow], axis=-1)            # (1, 2*H2)

    # ---- MLP predictor: one fused K=2*H2 matmul ; predictor-BN folded into wo/bo ----
    wm = hbf16_ref[0:2 * h2, 0:p1]                    # (2*H2, P1) bf16
    wo = hbf16_ref[2 * h2:2 * h2 + p1, :]             # (P1, NT_PAD) bf16, BN-folded, lane-padded
    bm = hf32_ref[2:3, 0:p1]
    bo = hf32_ref[3:4, :]
    hg = hg_s[...].astype(bf16)                       # (G_pad, 2*H2)
    hidden = jnp.maximum(jnp.dot(hg, wm, preferred_element_type=f32) + bm, 0.0)
    # lane-dense (NT_PAD) + sublane-dense (G_pad) unmasked store; padding sliced outside
    out_ref[...] = jnp.dot(hidden.astype(bf16), wo, preferred_element_type=f32) + bo


def mtgcn_forward(a_stk, x_stk, seg_off, seg_cnt, shared, tasks, *, seg_size, n_tasks_out):
    """All tasks of MTGCNPredictor.forward in one gridded pallas_call.

    a_stk:(T,N,N) int8 0/1 adjacency, x_stk:(T,N,F) bf16, seg_off/seg_cnt:(G,) int32
    (scalar-prefetched). shared: block-diag-fused shared-GCN params. tasks: packed
    per-task head slabs (head_f32:(T,8,128), head_bf16:(T,2*H2+P1,128)).
    Returns (T, G, n_tasks_out) float32.
    """
    T, N, _ = a_stk.shape
    fin = x_stk.shape[-1]
    G = seg_off.shape[0]
    H1 = shared["sc1"].shape[1]
    H2 = shared["sc2"].shape[1]
    P1 = tasks["head_bf16"].shape[1] - 2 * H2
    G_pad = ((G + 7) // 8) * 8

    # Host-side enforcement of the contract assumed by the in-kernel pl.ds segment slices
    # (pl.multiple_of is only a hint and VMEM refs have no bounds check).
    so = np.asarray(seg_off)
    sc = np.asarray(seg_cnt)
    assert so.shape == (G,) and sc.shape == (G,)
    assert np.all(so % 8 == 0), "segment offsets must be sublane (8-node) aligned"
    assert np.all((sc >= 1) & (sc <= seg_size)), "segment counts must lie in [1, seg_size]"
    assert np.all(so + seg_size <= N), "segment windows must stay inside the node buffer"

    def shared_spec(shape):
        # Constant index map -> fetched once, stays resident across the task grid.
        # TODO(synk): pipeline_mode=pl.Buffered(1) would also drop the dead second buffer.
        return pl.BlockSpec(shape, lambda t, off, cnt: (0,) * len(shape))

    def task_spec(shape):
        # Stacked per-task operand, leading task dim squeezed.
        # TODO(synk): if DMA is still exposed at realistic N (v5e), raise pipeline depth
        # with pipeline_mode=pl.Buffered(3) on the a/x specs.
        return pl.BlockSpec((None,) + shape, lambda t, off, cnt: (t,) + (0,) * len(shape))

    in_specs = [
        task_spec((N, N)),                              # a (int8)
        task_spec((N, fin)),                            # x (bf16)
        shared_spec(shared["wblk1"].shape),             # [[W1,0],[0,Wr1]]
        shared_spec(shared["bblk1"].shape),             # [b1 | br1]
        shared_spec(shared["sc1"].shape), shared_spec(shared["sh1"].shape),
        shared_spec(shared["wblk2"].shape),
        shared_spec(shared["bblk2"].shape),
        shared_spec(shared["sc2"].shape), shared_spec(shared["sh2"].shape),
        task_spec(tasks["head_f32"].shape[1:]),         # packed f32 head slab (1 DMA)
        task_spec(tasks["head_bf16"].shape[1:]),        # packed bf16 head slab (1 DMA)
    ]
    args = [
        a_stk, x_stk,
        shared["wblk1"], shared["bblk1"], shared["sc1"], shared["sh1"],
        shared["wblk2"], shared["bblk2"], shared["sc2"], shared["sh2"],
        tasks["head_f32"], tasks["head_bf16"],
    ]

    # VMEM budget from actual tile bytes, clamped generation-aware (v7x has 64 MiB/TC).
    # TODO(synk): at realistic N (dense A of tens of MiB) add a src-dimension reduction
    # grid axis that tiles A/X/h1 and accumulates agg in VMEM scratch (mandatory on v7x).
    # TODO(synk): if N stays small, block TB=4-8 tasks per grid step to amortize the
    # ~0.35 us fixed per-step overhead.
    def nbytes(v):
        return int(v.size) * v.dtype.itemsize
    per_step = (nbytes(a_stk) + nbytes(x_stk)
                + nbytes(tasks["head_f32"]) + nbytes(tasks["head_bf16"])) // T \
        + G_pad * NT_PAD * 4
    resident = 2 * sum(nbytes(shared[k]) for k in shared)
    scratch_bytes = 4 * (N * H2 + N + G_pad * 2 * H2)
    try:
        vmem_cap = int(pltpu.get_tpu_info().vmem_capacity_bytes)
    except Exception:
        vmem_cap = 64 << 20
    vmem_limit = int(min(max(2 * per_step + resident + scratch_bytes + (8 << 20), 16 << 20),
                         int(0.8 * vmem_cap)))

    flops = T * (2 * N * N * fin + 2 * N * (2 * fin) * (2 * H1)
                 + 2 * N * N * H1 + 2 * N * (2 * H1) * (2 * H2)
                 + 2 * N * H2
                 + 2 * G_pad * (2 * H2) * P1 + 2 * G_pad * P1 * NT_PAD)
    bytes_accessed = (sum(nbytes(v) for v in args) + nbytes(seg_off) + nbytes(seg_cnt)
                      + T * G_pad * NT_PAD * 4)

    out = pl.pallas_call(
        functools.partial(_mtgcn_kernel, seg_size=seg_size),
        out_shape=jax.ShapeDtypeStruct((T, G_pad, NT_PAD), jnp.float32),
        grid_spec=pltpu.PrefetchScalarGridSpec(
            num_scalar_prefetch=2,
            grid=(T,),
            in_specs=in_specs,
            out_specs=pl.BlockSpec((None, G_pad, NT_PAD), lambda t, off, cnt: (t, 0, 0)),
            scratch_shapes=[pltpu.VMEM((N, H2), jnp.float32),        # h2
                            pltpu.VMEM((N, 1), jnp.float32),         # atom gate
                            pltpu.VMEM((G_pad, 2 * H2), jnp.float32)],  # [sum|max] rows
        ),
        compiler_params=pltpu.CompilerParams(
            dimension_semantics=("parallel",),       # shards tasks across v7x's 2 TCs
            vmem_limit_bytes=vmem_limit,
        ),
        cost_estimate=pl.CostEstimate(
            flops=flops, transcendentals=T * N, bytes_accessed=bytes_accessed),
    )(seg_off, seg_cnt, *args)
    return out[:, :G, :n_tasks_out]                   # strip sublane/lane padding


def mtgcn_reference(a_stk, x_stk, seg_off, seg_cnt, shared, tasks, *, h1, h2, p1, n_tasks_out):
    """Pure-JAX reference with identical (bf16-matmul, BN-folded, packed-param) semantics."""
    f32, bf16 = jnp.float32, jnp.bfloat16
    T, N, _ = a_stk.shape
    node_pos = jnp.arange(N)[None, :]
    in_seg = ((node_pos >= seg_off[:, None]) &
              (node_pos < seg_off[:, None] + seg_cnt[:, None]))       # (G, N)
    outs = []
    for t in range(T):
        a = a_stk[t].astype(bf16)
        x = x_stk[t]
        agg1 = jnp.dot(a, x, preferred_element_type=f32)
        lhs1 = jnp.concatenate([agg1.astype(bf16), x], axis=-1)
        cr1 = jnp.maximum(jnp.dot(lhs1, shared["wblk1"], preferred_element_type=f32)
                          + shared["bblk1"], 0.0)
        h1v = cr1[:, :h1] + cr1[:, h1:]
        h1v = h1v * shared["sc1"] + shared["sh1"]
        h1b = h1v.astype(bf16)
        agg2 = jnp.dot(a, h1b, preferred_element_type=f32)
        lhs2 = jnp.concatenate([agg2.astype(bf16), h1b], axis=-1)
        cr2 = jnp.maximum(jnp.dot(lhs2, shared["wblk2"], preferred_element_type=f32)
                          + shared["bblk2"], 0.0)
        h2v = cr2[:, :h2] + cr2[:, h2:]
        h2v = h2v * shared["sc2"] + shared["sh2"]

        hf = tasks["head_f32"][t]
        hb = tasks["head_bf16"][t]
        ww = hf[0:1, 0:h2]
        bw = hf[1:2, 0:1]
        bm = hf[2:3, 0:p1]
        bo = hf[3:4, :]
        wm = hb[0:2 * h2, 0:p1]
        wo = hb[2 * h2:2 * h2 + p1, :]

        w_atom = jax.nn.sigmoid(jnp.sum(h2v * ww, axis=-1, keepdims=True) + bw)
        wh2 = w_atom * h2v
        hg_sum = jnp.sum(jnp.where(in_seg[:, :, None], wh2[None, :, :], 0.0), axis=1)
        hg_max = jnp.max(jnp.where(in_seg[:, :, None], h2v[None, :, :], -1e30), axis=1)
        hg = jnp.concatenate([hg_sum, hg_max], axis=-1).astype(bf16)
        hidden = jnp.maximum(jnp.dot(hg, wm, preferred_element_type=f32) + bm, 0.0)
        o = jnp.dot(hidden.astype(bf16), wo, preferred_element_type=f32) + bo
        outs.append(o[:, :n_tasks_out])
    return jnp.stack(outs, axis=0)


if __name__ == "__main__":
    TASKS_NUM = 2        # number of task heads (and batched graphs fed to forward)
    G = 2                # graphs per DGL batched graph
    NODES_PER_G = 16     # nodes per graph (contiguous, sublane-aligned segments)
    N = G * NODES_PER_G
    FIN = 8              # in_feats
    H1 = H2 = 32         # hidden_feats_shared = [32, 32]
    P1 = 32              # predictor_hidden_feats = [32]
    NT = 2               # n_tasks (outputs per head)

    key = jax.random.PRNGKey(0)
    keys = jax.random.split(key, 64)
    ki = iter(keys)
    bf16 = jnp.bfloat16

    def linear_init(k, fan_in, fan_out, scale=0.1):
        kw, kb = jax.random.split(k)
        w = scale * jax.random.normal(kw, (fan_in, fan_out), jnp.float32)
        b = scale * jax.random.normal(kb, (1, fan_out), jnp.float32)
        return w, b

    def bn_fold(k, feats, eps=1e-5):
        kg, kb, km, kv = jax.random.split(k, 4)
        gamma = 1.0 + 0.1 * jax.random.normal(kg, (feats,), jnp.float32)
        beta = 0.1 * jax.random.normal(kb, (feats,), jnp.float32)
        mean = 0.1 * jax.random.normal(km, (feats,), jnp.float32)
        var = jax.random.uniform(kv, (feats,), jnp.float32, 0.5, 1.5)
        scale = gamma / jnp.sqrt(var + eps)
        shift = beta - mean * scale
        return scale.reshape(1, -1), shift.reshape(1, -1)

    # ---- shared GCN params (gnn_norm='none' default), conv/residual weights fused
    #      into block-diagonal bf16 matrices and biases concatenated along lanes ----
    w1, b1 = linear_init(next(ki), FIN, H1)
    wr1, br1 = linear_init(next(ki), FIN, H1)
    sc1, sh1 = bn_fold(next(ki), H1)
    w2, b2 = linear_init(next(ki), H1, H2)
    wr2, br2 = linear_init(next(ki), H1, H2)
    sc2, sh2 = bn_fold(next(ki), H2)
    wblk1 = (jnp.zeros((2 * FIN, 2 * H1), jnp.float32)
             .at[:FIN, :H1].set(w1).at[FIN:, H1:].set(wr1)).astype(bf16)
    bblk1 = jnp.concatenate([b1, br1], axis=1)
    wblk2 = (jnp.zeros((2 * H1, 2 * H2), jnp.float32)
             .at[:H1, :H2].set(w2).at[H1:, H2:].set(wr2)).astype(bf16)
    bblk2 = jnp.concatenate([b2, br2], axis=1)
    shared = dict(wblk1=wblk1, bblk1=bblk1, sc1=sc1, sh1=sh1,
                  wblk2=wblk2, bblk2=bblk2, sc2=sc2, sh2=sh2)

    # ---- per-task readout + predictor params packed into two contiguous slabs ----
    # f32 slab rows: 0=gate weight ww, 1=gate bias bw, 2=bm, 3=bo (BN-folded, lane-padded)
    # bf16 slab rows: [0:2*H2)=wm (fused sum|max), [2*H2:2*H2+P1)=wo (BN-folded, lane-padded)
    hf32_l, hb16_l = [], []
    for _ in range(TASKS_NUM):
        ww, bw = linear_init(next(ki), H2, 1)
        wm, bm = linear_init(next(ki), 2 * H2, P1)
        scm, shm = bn_fold(next(ki), P1)
        wo, bo = linear_init(next(ki), P1, NT)
        # fold predictor BatchNorm (Dropout->Linear->ReLU->BN, then output Linear):
        # out = (relu(m)*scm + shm) @ wo + bo  ==  relu(m) @ (scm^T * wo) + (shm @ wo + bo)
        wo_f = scm.reshape(-1, 1) * wo
        bo_f = shm @ wo + bo
        hf = jnp.zeros((8, NT_PAD), jnp.float32)
        hf = hf.at[0, :H2].set(ww[:, 0])
        hf = hf.at[1, 0].set(bw[0, 0])
        hf = hf.at[2, :P1].set(bm[0])
        hf = hf.at[3, :NT].set(bo_f[0])
        hb = jnp.zeros((2 * H2 + P1, NT_PAD), jnp.float32)
        hb = hb.at[:2 * H2, :P1].set(wm)
        hb = hb.at[2 * H2:, :NT].set(wo_f)
        hf32_l.append(hf)
        hb16_l.append(hb.astype(bf16))
    tasks = dict(head_f32=jnp.stack(hf32_l), head_bf16=jnp.stack(hb16_l))

    # ---- per-task batched graphs (block-diagonal adjacency + self loops), int8 HBM ----
    block_mask = jnp.kron(jnp.eye(G, dtype=jnp.float32),
                          jnp.ones((NODES_PER_G, NODES_PER_G), jnp.float32))
    a_l, x_l = [], []
    for _ in range(TASKS_NUM):
        ka, kx = jax.random.split(next(ki))
        adj = (jax.random.uniform(ka, (N, N)) < 0.3).astype(jnp.float32)
        adj = jnp.minimum(adj * block_mask + jnp.eye(N, dtype=jnp.float32), 1.0)
        a_l.append(adj.astype(jnp.int8))               # 0/1 adjacency, exact in int8
        x_l.append(jax.random.normal(kx, (N, FIN), jnp.float32).astype(bf16))
    a_stk = jnp.stack(a_l)
    x_stk = jnp.stack(x_l)

    # contiguous DGL-style node segments: start offset and node count per graph
    seg_off = jnp.arange(G, dtype=jnp.int32) * NODES_PER_G
    seg_cnt = jnp.full((G,), NODES_PER_G, dtype=jnp.int32)

    out = mtgcn_forward(a_stk, x_stk, seg_off, seg_cnt, shared, tasks,
                        seg_size=NODES_PER_G, n_tasks_out=NT)
    jax.block_until_ready(out)

    ref = mtgcn_reference(a_stk, x_stk, seg_off, seg_cnt, shared, tasks,
                          h1=H1, h2=H2, p1=P1, n_tasks_out=NT)
    assert out.shape == (TASKS_NUM, G, NT)
    assert jnp.allclose(out, ref, rtol=5e-3, atol=5e-3), (
        f"mismatch: max abs diff {jnp.max(jnp.abs(out - ref))}")

    print("KERNEL_OK")
</pallas_src>

<mosaic_0001>
module attributes {stable_mosaic.version = 11 : i64} {
  func.func @_mtgcn_kernel(%arg0: i32, %arg1: memref<2xi32, #tpu.memory_space<smem>>, %arg2: memref<2xi32, #tpu.memory_space<smem>>, %arg3: memref<1x32x32xi8, #tpu.memory_space<vmem>>, %arg4: memref<1x32x8xbf16, #tpu.memory_space<vmem>>, %arg5: memref<16x64xbf16, #tpu.memory_space<vmem>>, %arg6: memref<1x64xf32, #tpu.memory_space<vmem>>, %arg7: memref<1x32xf32, #tpu.memory_space<vmem>>, %arg8: memref<1x32xf32, #tpu.memory_space<vmem>>, %arg9: memref<64x64xbf16, #tpu.memory_space<vmem>>, %arg10: memref<1x64xf32, #tpu.memory_space<vmem>>, %arg11: memref<1x32xf32, #tpu.memory_space<vmem>>, %arg12: memref<1x32xf32, #tpu.memory_space<vmem>>, %arg13: memref<1x8x128xf32, #tpu.memory_space<vmem>>, %arg14: memref<1x96x128xbf16, #tpu.memory_space<vmem>>, %arg15: memref<1x8x128xf32, #tpu.memory_space<vmem>>, %arg16: memref<32x32xf32, #tpu.memory_space<vmem>>, %arg17: memref<32x1xf32, #tpu.memory_space<vmem>>, %arg18: memref<8x64xf32, #tpu.memory_space<vmem>>) attributes {dimension_semantics = [#tpu.dimension_semantics<parallel>], iteration_bounds = array<i64: 2>, scalar_prefetch = 2 : i64, scratch_operands = 3 : i64, tpu.core_type = #tpu.core_type<tc>, window_params = [{transform_indices = @transform_0, window_bounds = array<i64: 1, 32, 32>}, {transform_indices = @transform_1, window_bounds = array<i64: 1, 32, 8>}, {pipeline_mode = #tpu.pipeline_mode<synchronous>, transform_indices = @transform_2, window_bounds = array<i64: 16, 64>}, {pipeline_mode = #tpu.pipeline_mode<synchronous>, transform_indices = @transform_3, window_bounds = array<i64: 1, 64>}, {pipeline_mode = #tpu.pipeline_mode<synchronous>, transform_indices = @transform_4, window_bounds = array<i64: 1, 32>}, {pipeline_mode = #tpu.pipeline_mode<synchronous>, transform_indices = @transform_5, window_bounds = array<i64: 1, 32>}, {pipeline_mode = #tpu.pipeline_mode<synchronous>, transform_indices = @transform_6, window_bounds = array<i64: 64, 64>}, {pipeline_mode = #tpu.pipeline_mode<synchronous>, transform_indices = @transform_7, window_bounds = array<i64: 1, 64>}, {pipeline_mode = #tpu.pipeline_mode<synchronous>, transform_indices = @transform_8, window_bounds = array<i64: 1, 32>}, {pipeline_mode = #tpu.pipeline_mode<synchronous>, transform_indices = @transform_9, window_bounds = array<i64: 1, 32>}, {transform_indices = @transform_10, window_bounds = array<i64: 1, 8, 128>}, {transform_indices = @transform_11, window_bounds = array<i64: 1, 96, 128>}, {transform_indices = @transform_12, window_bounds = array<i64: 1, 8, 128>}]} {
    %c0 = arith.constant 0 : index
    %c0_0 = arith.constant 0 : index
    %c0_1 = arith.constant 0 : index
    %0 = vector.load %arg3[%c0, %c0_0, %c0_1] : memref<1x32x32xi8, #tpu.memory_space<vmem>>, vector<1x32x32xi8>
    %1 = vector.shape_cast %0 : vector<1x32x32xi8> to vector<32x32xi8>
    %2 = arith.sitofp %1 : vector<32x32xi8> to vector<32x32xbf16>
    %c0_2 = arith.constant 0 : index
    %c0_3 = arith.constant 0 : index
    %c0_4 = arith.constant 0 : index
    %3 = vector.load %arg4[%c0_2, %c0_3, %c0_4] : memref<1x32x8xbf16, #tpu.memory_space<vmem>>, vector<1x32x8xbf16>
    %4 = vector.shape_cast %3 : vector<1x32x8xbf16> to vector<32x8xbf16>
    %cst = arith.constant dense<0.000000e+00> : vector<32x8xf32>
    %5 = tpu.matmul %2, %4, %cst {dimension_numbers = #tpu.dot_dimension_numbers<[1], [0], [0], [1], [0, 0, 1, 1], [], []>} : vector<32x32xbf16>, vector<32x8xbf16>, vector<32x8xf32> -> vector<32x8xf32>
    %6 = arith.truncf %5 : vector<32x8xf32> to vector<32x8xbf16>
    %7 = tpu.concatenate %6, %4 in 1 : vector<32x8xbf16>, vector<32x8xbf16> -> vector<32x16xbf16>
    %c0_5 = arith.constant 0 : index
    %c0_6 = arith.constant 0 : index
    %8 = vector.load %arg5[%c0_5, %c0_6] : memref<16x64xbf16, #tpu.memory_space<vmem>>, vector<16x64xbf16>
    %cst_7 = arith.constant dense<0.000000e+00> : vector<32x64xf32>
    %9 = tpu.matmul %7, %8, %cst_7 {dimension_numbers = #tpu.dot_dimension_numbers<[1], [0], [0], [1], [0, 0, 1, 1], [], []>} : vector<32x16xbf16>, vector<16x64xbf16>, vector<32x64xf32> -> vector<32x64xf32>
    %c0_8 = arith.constant 0 : index
    %c0_9 = arith.constant 0 : index
    %10 = vector.load %arg6[%c0_8, %c0_9] : memref<1x64xf32, #tpu.memory_space<vmem>>, vector<1x64xf32>
    %11 = vector.broadcast %10 : vector<1x64xf32> to vector<32x64xf32>
    %12 = arith.addf %9, %11 : vector<32x64xf32>
    %cst_10 = arith.constant 0.000000e+00 : f32
    %13 = vector.broadcast %cst_10 : f32 to vector<32x64xf32>
    %14 = arith.maximumf %12, %13 : vector<32x64xf32>
    %15 = vector.extract_strided_slice %14 {offsets = [0, 0], sizes = [32, 32], strides = [1, 1]} : vector<32x64xf32> to vector<32x32xf32>
    %16 = vector.extract_strided_slice %14 {offsets = [0, 32], sizes = [32, 32], strides = [1, 1]} : vector<32x64xf32> to vector<32x32xf32>
    %17 = arith.addf %15, %16 : vector<32x32xf32>
    %c0_11 = arith.constant 0 : index
    %c0_12 = arith.constant 0 : index
    %18 = vector.load %arg7[%c0_11, %c0_12] : memref<1x32xf32, #tpu.memory_space<vmem>>, vector<1x32xf32>
    %19 = vector.broadcast %18 : vector<1x32xf32> to vector<32x32xf32>
    %20 = arith.mulf %17, %19 : vector<32x32xf32>
    %c0_13 = arith.constant 0 : index
    %c0_14 = arith.constant 0 : index
    %21 = vector.load %arg8[%c0_13, %c0_14] : memref<1x32xf32, #tpu.memory_space<vmem>>, vector<1x32xf32>
    %22 = vector.broadcast %21 : vector<1x32xf32> to vector<32x32xf32>
    %23 = arith.addf %20, %22 : vector<32x32xf32>
    %24 = arith.truncf %23 : vector<32x32xf32> to vector<32x32xbf16>
    %cst_15 = arith.constant dense<0.000000e+00> : vector<32x32xf32>
    %25 = tpu.matmul %2, %24, %cst_15 {dimension_numbers = #tpu.dot_dimension_numbers<[1], [0], [0], [1], [0, 0, 1, 1], [], []>} : vector<32x32xbf16>, vector<32x32xbf16>, vector<32x32xf32> -> vector<32x32xf32>
    %26 = arith.truncf %25 : vector<32x32xf32> to vector<32x32xbf16>
    %27 = tpu.concatenate %26, %24 in 1 : vector<32x32xbf16>, vector<32x32xbf16> -> vector<32x64xbf16>
    %c0_16 = arith.constant 0 : index
    %c0_17 = arith.constant 0 : index
    %28 = vector.load %arg9[%c0_16, %c0_17] : memref<64x64xbf16, #tpu.memory_space<vmem>>, vector<64x64xbf16>
    %cst_18 = arith.constant dense<0.000000e+00> : vector<32x64xf32>
    %29 = tpu.matmul %27, %28, %cst_18 {dimension_numbers = #tpu.dot_dimension_numbers<[1], [0], [0], [1], [0, 0, 1, 1], [], []>} : vector<32x64xbf16>, vector<64x64xbf16>, vector<32x64xf32> -> vector<32x64xf32>
    %c0_19 = arith.constant 0 : index
    %c0_20 = arith.constant 0 : index
    %30 = vector.load %arg10[%c0_19, %c0_20] : memref<1x64xf32, #tpu.memory_space<vmem>>, vector<1x64xf32>
    %31 = vector.broadcast %30 : vector<1x64xf32> to vector<32x64xf32>
    %32 = arith.addf %29, %31 : vector<32x64xf32>
    %cst_21 = arith.constant 0.000000e+00 : f32
    %33 = vector.broadcast %cst_21 : f32 to vector<32x64xf32>
    %34 = arith.maximumf %32, %33 : vector<32x64xf32>
    %35 = vector.extract_strided_slice %34 {offsets = [0, 0], sizes = [32, 32], strides = [1, 1]} : vector<32x64xf32> to vector<32x32xf32>
    %36 = vector.extract_strided_slice %34 {offsets = [0, 32], sizes = [32, 32], strides = [1, 1]} : vector<32x64xf32> to vector<32x32xf32>
    %37 = arith.addf %35, %36 : vector<32x32xf32>
    %c0_22 = arith.constant 0 : index
    %c0_23 = arith.constant 0 : index
    %38 = vector.load %arg11[%c0_22, %c0_23] : memref<1x32xf32, #tpu.memory_space<vmem>>, vector<1x32xf32>
    %39 = vector.broadcast %38 : vector<1x32xf32> to vector<32x32xf32>
    %40 = arith.mulf %37, %39 : vector<32x32xf32>
    %c0_24 = arith.constant 0 : index
    %c0_25 = arith.constant 0 : index
    %41 = vector.load %arg12[%c0_24, %c0_25] : memref<1x32xf32, #tpu.memory_space<vmem>>, vector<1x32xf32>
    %42 = vector.broadcast %41 : vector<1x32xf32> to vector<32x32xf32>
    %43 = arith.addf %40, %42 : vector<32x32xf32>
    %c0_26 = arith.constant 0 : index
    %c0_27 = arith.constant 0 : index
    %c0_28 = arith.constant 0 : index
    %44 = vector.load %arg13[%c0_26, %c0_27, %c0_28] : memref<1x8x128xf32, #tpu.memory_space<vmem>>, vector<1x1x32xf32>
    %45 = vector.shape_cast %44 : vector<1x1x32xf32> to vector<1x32xf32>
    %c0_29 = arith.constant 0 : index
    %c1 = arith.constant 1 : index
    %c0_30 = arith.constant 0 : index
    %46 = vector.load %arg13[%c0_29, %c1, %c0_30] : memref<1x8x128xf32, #tpu.memory_space<vmem>>, vector<1x1x1xf32>
    %47 = vector.shape_cast %46 : vector<1x1x1xf32> to vector<1x1xf32>
    %48 = vector.broadcast %45 : vector<1x32xf32> to vector<32x32xf32>
    %49 = arith.mulf %43, %48 : vector<32x32xf32>
    %cst_31 = arith.constant dense<0.000000e+00> : vector<32xf32>
    %50 = vector.multi_reduction <add>, %49, %cst_31 [1] : vector<32x32xf32> to vector<32xf32>
    %51 = vector.shape_cast %50 : vector<32xf32> to vector<32x1xf32>
    %52 = vector.broadcast %47 : vector<1x1xf32> to vector<32x1xf32>
    %53 = arith.addf %51, %52 : vector<32x1xf32>
    %54 = arith.negf %53 : vector<32x1xf32>
    %55 = math.exp %54 : vector<32x1xf32>
    %cst_32 = arith.constant 1.000000e+00 : f32
    %56 = vector.broadcast %cst_32 : f32 to vector<32x1xf32>
    %57 = arith.addf %56, %55 : vector<32x1xf32>
    %58 = arith.divf %56, %57 : vector<32x1xf32>
    %c0_33 = arith.constant 0 : index
    %c0_34 = arith.constant 0 : index
    %59 = vector.load %arg16[%c0_33, %c0_34] : memref<32x32xf32, #tpu.memory_space<vmem>>, vector<32x32xf32>
    tpu.vector_store %arg16[%c0_33, %c0_34], %43 {strides = array<i32>} : memref<32x32xf32, #tpu.memory_space<vmem>>, vector<32x32xf32>,
    %c0_35 = arith.constant 0 : index
    %c0_36 = arith.constant 0 : index
    %60 = vector.load %arg17[%c0_35, %c0_36] : memref<32x1xf32, #tpu.memory_space<vmem>>, vector<32x1xf32>
    tpu.vector_store %arg17[%c0_35, %c0_36], %58 {strides = array<i32>} : memref<32x1xf32, #tpu.memory_space<vmem>>, vector<32x1xf32>,
    %cst_37 = arith.constant 0.000000e+00 : f32
    %61 = vector.broadcast %cst_37 : f32 to vector<8x64xf32>
    %c0_38 = arith.constant 0 : index
    %c0_39 = arith.constant 0 : index
    %62 = vector.load %arg18[%c0_38, %c0_39] : memref<8x64xf32, #tpu.memory_space<vmem>>, vector<8x64xf32>
    tpu.vector_store %arg18[%c0_38, %c0_39], %61 {strides = array<i32>} : memref<8x64xf32, #tpu.memory_space<vmem>>, vector<8x64xf32>,
    %63 = tpu.iota {dimensions = array<i32: 0>} : vector<16x32xi32>
    %c0_40 = arith.constant 0 : index
    %64 = memref.load %arg1[%c0_40] : memref<2xi32, #tpu.memory_space<smem>>
    %65 = tpu.assume_multiple %64, 8 : i32
    %c0_41 = arith.constant 0 : index
    %66 = memref.load %arg2[%c0_41] : memref<2xi32, #tpu.memory_space<smem>>
    %67 = vector.broadcast %66 : i32 to vector<16x32xi32>
    %68 = arith.cmpi slt, %63, %67 : vector<16x32xi32>
    %69 = arith.index_cast %65 : i32 to index
    %c0_42 = arith.constant 0 : index
    %70 = vector.load %arg16[%69, %c0_42] : memref<32x32xf32, #tpu.memory_space<vmem>>, vector<16x32xf32>
    %71 = arith.index_cast %65 : i32 to index
    %c0_43 = arith.constant 0 : index
    %72 = vector.load %arg17[%71, %c0_43] : memref<32x1xf32, #tpu.memory_space<vmem>>, vector<16x1xf32>
    %73 = vector.broadcast %72 : vector<16x1xf32> to vector<16x32xf32>
    %74 = arith.mulf %73, %70 : vector<16x32xf32>
    %cst_44 = arith.constant 0.000000e+00 : f32
    %75 = vector.broadcast %cst_44 : f32 to vector<16x32xf32>
    %76 = arith.select %68, %74, %75 : vector<16x32xi1>, vector<16x32xf32>
    %cst_45 = arith.constant dense<0.000000e+00> : vector<32xf32>
    %77 = vector.multi_reduction <add>, %76, %cst_45 [0] : vector<16x32xf32> to vector<32xf32>
    %78 = vector.shape_cast %77 : vector<32xf32> to vector<1x32xf32>
    %cst_46 = arith.constant -1.000000e+30 : f32
    %79 = vector.broadcast %cst_46 : f32 to vector<16x32xf32>
    %80 = arith.select %68, %70, %79 : vector<16x32xi1>, vector<16x32xf32>
    %cst_47 = arith.constant dense<0xFF800000> : vector<32xf32>
    %81 = vector.multi_reduction <maximumf>, %80, %cst_47 [0] : vector<16x32xf32> to vector<32xf32>
    %82 = vector.shape_cast %81 : vector<32xf32> to vector<1x32xf32>
    %83 = tpu.concatenate %78, %82 in 1 : vector<1x32xf32>, vector<1x32xf32> -> vector<1x64xf32>
    %c0_48 = arith.constant 0 : index
    %c0_49 = arith.constant 0 : index
    %84 = vector.load %arg18[%c0_48, %c0_49] : memref<8x64xf32, #tpu.memory_space<vmem>>, vector<1x64xf32>
    tpu.vector_store %arg18[%c0_48, %c0_49], %83 {strides = array<i32>} : memref<8x64xf32, #tpu.memory_space<vmem>>, vector<1x64xf32>,
    %c1_50 = arith.constant 1 : index
    %85 = memref.load %arg1[%c1_50] : memref<2xi32, #tpu.memory_space<smem>>
    %86 = tpu.assume_multiple %85, 8 : i32
    %c1_51 = arith.constant 1 : index
    %87 = memref.load %arg2[%c1_51] : memref<2xi32, #tpu.memory_space<smem>>
    %88 = vector.broadcast %87 : i32 to vector<16x32xi32>
    %89 = arith.cmpi slt, %63, %88 : vector<16x32xi32>
    %90 = arith.index_cast %86 : i32 to index
    %c0_52 = arith.constant 0 : index
    %91 = vector.load %arg16[%90, %c0_52] : memref<32x32xf32, #tpu.memory_space<vmem>>, vector<16x32xf32>
    %92 = arith.index_cast %86 : i32 to index
    %c0_53 = arith.constant 0 : index
    %93 = vector.load %arg17[%92, %c0_53] : memref<32x1xf32, #tpu.memory_space<vmem>>, vector<16x1xf32>
    %94 = vector.broadcast %93 : vector<16x1xf32> to vector<16x32xf32>
    %95 = arith.mulf %94, %91 : vector<16x32xf32>
    %cst_54 = arith.constant 0.000000e+00 : f32
    %96 = vector.broadcast %cst_54 : f32 to vector<16x32xf32>
    %97 = arith.select %89, %95, %96 : vector<16x32xi1>, vector<16x32xf32>
    %cst_55 = arith.constant dense<0.000000e+00> : vector<32xf32>
    %98 = vector.multi_reduction <add>, %97, %cst_55 [0] : vector<16x32xf32> to vector<32xf32>
    %99 = vector.shape_cast %98 : vector<32xf32> to vector<1x32xf32>
    %cst_56 = arith.constant -1.000000e+30 : f32
    %100 = vector.broadcast %cst_56 : f32 to vector<16x32xf32>
    %101 = arith.select %89, %91, %100 : vector<16x32xi1>, vector<16x32xf32>
    %cst_57 = arith.constant dense<0xFF800000> : vector<32xf32>
    %102 = vector.multi_reduction <maximumf>, %101, %cst_57 [0] : vector<16x32xf32> to vector<32xf32>
    %103 = vector.shape_cast %102 : vector<32xf32> to vector<1x32xf32>
    %104 = tpu.concatenate %99, %103 in 1 : vector<1x32xf32>, vector<1x32xf32> -> vector<1x64xf32>
    %c1_58 = arith.constant 1 : index
    %c0_59 = arith.constant 0 : index
    %105 = vector.load %arg18[%c1_58, %c0_59] : memref<8x64xf32, #tpu.memory_space<vmem>>, vector<1x64xf32>
    tpu.vector_store %arg18[%c1_58, %c0_59], %104 {strides = array<i32>} : memref<8x64xf32, #tpu.memory_space<vmem>>, vector<1x64xf32>,
    %c0_60 = arith.constant 0 : index
    %c0_61 = arith.constant 0 : index
    %c0_62 = arith.constant 0 : index
    %106 = vector.load %arg14[%c0_60, %c0_61, %c0_62] : memref<1x96x128xbf16, #tpu.memory_space<vmem>>, vector<1x64x32xbf16>
    %107 = vector.shape_cast %106 : vector<1x64x32xbf16> to vector<64x32xbf16>
    %c0_63 = arith.constant 0 : index
    %c64 = arith.constant 64 : index
    %c0_64 = arith.constant 0 : index
    %108 = vector.load %arg14[%c0_63, %c64, %c0_64] : memref<1x96x128xbf16, #tpu.memory_space<vmem>>, vector<1x32x128xbf16>
    %109 = vector.shape_cast %108 : vector<1x32x128xbf16> to vector<32x128xbf16>
    %c0_65 = arith.constant 0 : index
    %c2 = arith.constant 2 : index
    %c0_66 = arith.constant 0 : index
    %110 = vector.load %arg13[%c0_65, %c2, %c0_66] : memref<1x8x128xf32, #tpu.memory_space<vmem>>, vector<1x1x32xf32>
    %111 = vector.shape_cast %110 : vector<1x1x32xf32> to vector<1x32xf32>
    %c0_67 = arith.constant 0 : index
    %c3 = arith.constant 3 : index
    %c0_68 = arith.constant 0 : index
    %112 = vector.load %arg13[%c0_67, %c3, %c0_68] : memref<1x8x128xf32, #tpu.memory_space<vmem>>, vector<1x1x128xf32>
    %113 = vector.shape_cast %112 : vector<1x1x128xf32> to vector<1x128xf32>
    %c0_69 = arith.constant 0 : index
    %c0_70 = arith.constant 0 : index
    %114 = vector.load %arg18[%c0_69, %c0_70] : memref<8x64xf32, #tpu.memory_space<vmem>>, vector<8x64xf32>
    %115 = arith.truncf %114 : vector<8x64xf32> to vector<8x64xbf16>
    %cst_71 = arith.constant dense<0.000000e+00> : vector<8x32xf32>
    %116 = tpu.matmul %115, %107, %cst_71 {dimension_numbers = #tpu.dot_dimension_numbers<[1], [0], [0], [1], [0, 0, 1, 1], [], []>} : vector<8x64xbf16>, vector<64x32xbf16>, vector<8x32xf32> -> vector<8x32xf32>
    %117 = vector.broadcast %111 : vector<1x32xf32> to vector<8x32xf32>
    %118 = arith.addf %116, %117 : vector<8x32xf32>
    %cst_72 = arith.constant 0.000000e+00 : f32
    %119 = vector.broadcast %cst_72 : f32 to vector<8x32xf32>
    %120 = arith.maximumf %118, %119 : vector<8x32xf32>
    %121 = arith.truncf %120 : vector<8x32xf32> to vector<8x32xbf16>
    %cst_73 = arith.constant dense<0.000000e+00> : vector<8x128xf32>
    %122 = tpu.matmul %121, %109, %cst_73 {dimension_numbers = #tpu.dot_dimension_numbers<[1], [0], [0], [1], [0, 0, 1, 1], [], []>} : vector<8x32xbf16>, vector<32x128xbf16>, vector<8x128xf32> -> vector<8x128xf32>
    %123 = vector.broadcast %113 : vector<1x128xf32> to vector<8x128xf32>
    %124 = arith.addf %122, %123 : vector<8x128xf32>
    %c0_74 = arith.constant 0 : index
    %c0_75 = arith.constant 0 : index
    %c0_76 = arith.constant 0 : index
    %125 = vector.load %arg15[%c0_74, %c0_75, %c0_76] : memref<1x8x128xf32, #tpu.memory_space<vmem>>, vector<1x8x128xf32>
    %126 = vector.shape_cast %125 : vector<1x8x128xf32> to vector<8x128xf32>
    %127 = vector.shape_cast %124 : vector<8x128xf32> to vector<1x8x128xf32>
    tpu.vector_store %arg15[%c0_74, %c0_75, %c0_76], %127 {strides = array<i32>} : memref<1x8x128xf32, #tpu.memory_space<vmem>>, vector<1x8x128xf32>,
    return
  }
  func.func @transform_0(%arg0: i32, %arg1: memref<2xi32, #tpu.memory_space<smem>>, %arg2: memref<2xi32, #tpu.memory_space<smem>>) -> (i32, i32, i32) {
    %c0_i32 = arith.constant 0 : i32
    %c0_i32_0 = arith.constant 0 : i32
    %c0_i32_1 = arith.constant 0 : i32
    return %arg0, %c0_i32, %c0_i32_0 : i32, i32, i32
  }
  func.func @transform_1(%arg0: i32, %arg1: memref<2xi32, #tpu.memory_space<smem>>, %arg2: memref<2xi32, #tpu.memory_space<smem>>) -> (i32, i32, i32) {
    %c0_i32 = arith.constant 0 : i32
    %c0_i32_0 = arith.constant 0 : i32
    %c0_i32_1 = arith.constant 0 : i32
    return %arg0, %c0_i32, %c0_i32_0 : i32, i32, i32
  }
  func.func @transform_2(%arg0: i32, %arg1: memref<2xi32, #tpu.memory_space<smem>>, %arg2: memref<2xi32, #tpu.memory_space<smem>>) -> (i32, i32) {
    %c0_i32 = arith.constant 0 : i32
    %c0_i32_0 = arith.constant 0 : i32
    %c0_i32_1 = arith.constant 0 : i32
    return %c0_i32, %c0_i32_0 : i32, i32
  }
  func.func @transform_3(%arg0: i32, %arg1: memref<2xi32, #tpu.memory_space<smem>>, %arg2: memref<2xi32, #tpu.memory_space<smem>>) -> (i32, i32) {
    %c0_i32 = arith.constant 0 : i32
    %c0_i32_0 = arith.constant 0 : i32
    %c0_i32_1 = arith.constant 0 : i32
    return %c0_i32, %c0_i32_0 : i32, i32
  }
  func.func @transform_4(%arg0: i32, %arg1: memref<2xi32, #tpu.memory_space<smem>>, %arg2: memref<2xi32, #tpu.memory_space<smem>>) -> (i32, i32) {
    %c0_i32 = arith.constant 0 : i32
    %c0_i32_0 = arith.constant 0 : i32
    %c0_i32_1 = arith.constant 0 : i32
    return %c0_i32, %c0_i32_0 : i32, i32
  }
  func.func @transform_5(%arg0: i32, %arg1: memref<2xi32, #tpu.memory_space<smem>>, %arg2: memref<2xi32, #tpu.memory_space<smem>>) -> (i32, i32) {
    %c0_i32 = arith.constant 0 : i32
    %c0_i32_0 = arith.constant 0 : i32
    %c0_i32_1 = arith.constant 0 : i32
    return %c0_i32, %c0_i32_0 : i32, i32
  }
  func.func @transform_6(%arg0: i32, %arg1: memref<2xi32, #tpu.memory_space<smem>>, %arg2: memref<2xi32, #tpu.memory_space<smem>>) -> (i32, i32) {
    %c0_i32 = arith.constant 0 : i32
    %c0_i32_0 = arith.constant 0 : i32
    %c0_i32_1 = arith.constant 0 : i32
    return %c0_i32, %c0_i32_0 : i32, i32
  }
  func.func @transform_7(%arg0: i32, %arg1: memref<2xi32, #tpu.memory_space<smem>>, %arg2: memref<2xi32, #tpu.memory_space<smem>>) -> (i32, i32) {
    %c0_i32 = arith.constant 0 : i32
    %c0_i32_0 = arith.constant 0 : i32
    %c0_i32_1 = arith.constant 0 : i32
    return %c0_i32, %c0_i32_0 : i32, i32
  }
  func.func @transform_8(%arg0: i32, %arg1: memref<2xi32, #tpu.memory_space<smem>>, %arg2: memref<2xi32, #tpu.memory_space<smem>>) -> (i32, i32) {
    %c0_i32 = arith.constant 0 : i32
    %c0_i32_0 = arith.constant 0 : i32
    %c0_i32_1 = arith.constant 0 : i32
    return %c0_i32, %c0_i32_0 : i32, i32
  }
  func.func @transform_9(%arg0: i32, %arg1: memref<2xi32, #tpu.memory_space<smem>>, %arg2: memref<2xi32, #tpu.memory_space<smem>>) -> (i32, i32) {
    %c0_i32 = arith.constant 0 : i32
    %c0_i32_0 = arith.constant 0 : i32
    %c0_i32_1 = arith.constant 0 : i32
    return %c0_i32, %c0_i32_0 : i32, i32
  }
  func.func @transform_10(%arg0: i32, %arg1: memref<2xi32, #tpu.memory_space<smem>>, %arg2: memref<2xi32, #tpu.memory_space<smem>>) -> (i32, i32, i32) {
    %c0_i32 = arith.constant 0 : i32
    %c0_i32_0 = arith.constant 0 : i32
    %c0_i32_1 = arith.constant 0 : i32
    return %arg0, %c0_i32, %c0_i32_0 : i32, i32, i32
  }
  func.func @transform_11(%arg0: i32, %arg1: memref<2xi32, #tpu.memory_space<smem>>, %arg2: memref<2xi32, #tpu.memory_space<smem>>) -> (i32, i32, i32) {
    %c0_i32 = arith.constant 0 : i32
    %c0_i32_0 = arith.constant 0 : i32
    %c0_i32_1 = arith.constant 0 : i32
    return %arg0, %c0_i32, %c0_i32_0 : i32, i32, i32
  }
  func.func @transform_12(%arg0: i32, %arg1: memref<2xi32, #tpu.memory_space<smem>>, %arg2: memref<2xi32, #tpu.memory_space<smem>>) -> (i32, i32, i32) {
    %c0_i32 = arith.constant 0 : i32
    %c0_i32_0 = arith.constant 0 : i32
    %c0_i32_1 = arith.constant 0 : i32
    return %arg0, %c0_i32, %c0_i32_0 : i32, i32, i32
  }
}

</mosaic_0001>

<bundles_post_ra>
// kernel: tpu_custom_call.1
= control target key start
LH: loop header
LB: loop body
LE: loop exit
PB: predicated region body
PF: predicated region fallthrough
CT: control target
= control target key end

     0   :  { %s1969_s19 = smov [#allocation6]   ;;  %s1970_s20 = smov [#allocation7]   ;;  %s2435_s0 = inlined_call_operand.hbm [shape: s32[2], index: 0, kind: input, shape index: {}]   ;;  %s2436_s2 = inlined_call_operand.hbm [shape: s8[2,32,32], index: 2, kind: input, shape index: {}]   ;;  %s2437_s3 = inlined_call_operand.vmem [shape: bf16[2,32,8], index: 3, kind: input, shape index: {}]   ;;  %s2438_s4 = inlined_call_operand.hbm [shape: bf16[16,64], index: 4, kind: input, shape index: {}]   ;;  %s2439_s5 = inlined_call_operand.hbm [shape: f32[1,64], index: 5, kind: input, shape index: {}]   ;;  %s2440_s6 = inlined_call_operand.hbm [shape: f32[1,32], index: 6, kind: input, shape index: {}]   ;;  %s2441_s7 = inlined_call_operand.hbm [shape: f32[1,32], index: 7, kind: input, shape index: {}]   ;;  %s2442_s8 = inlined_call_operand.vmem [shape: bf16[64,64], index: 8, kind: input, shape index: {}]   ;;  %s2443_s9 = inlined_call_operand.hbm [shape: f32[1,64], index: 9, kind: input, shape index: {}]   ;;  %s2444_s10 = inlined_call_operand.vmem [shape: f32[1,32], index: 10, kind: input, shape index: {}]   ;;  %s2445_s11 = inlined_call_operand.vmem [shape: f32[1,32], index: 11, kind: input, shape index: {}]   ;;  %s2446_s12 = inlined_call_operand.vmem [shape: f32[2,8,128], index: 12, kind: input, shape index: {}]   ;;  %s2447_s13 = inlined_call_operand.hbm [shape: bf16[2,96,128], index: 13, kind: input, shape index: {}]   ;;  %s2448_s14 = inlined_call_operand.hbm [shape: f32[2,8,128], index: 14, kind: output, shape index: {}]   ;;  %s2449_s1 = inlined_call_operand.hbm [shape: s32[2], index: 1, kind: input, shape index: {}]  }
   0x1   :  { %2461 = sst [smem:[#allocation34_spill]] %s2436_s2  ;;  %s20_s15 = sshll.u32 %s2435_s0, 4  ;;  %s21_s15 = int_to_ptr.hbm [resolvable:$true] %s20_s15 }
   0x2   :  { %2462 = sst [smem:[#allocation35_spill]] %s2438_s4  ;;  %s25_s18 = sshll.u32 %s2449_s1, 4  ;;  %s26_s18 = int_to_ptr.hbm [resolvable:$true] %s25_s18 }
   0x3   :  { %2463 = sst [smem:[#allocation36_spill]] %s2440_s6 }
   0x4   :  { %2464 = sst [smem:[#allocation37_spill]] %s2445_s11 }
   0x5   :  { %2465 = sst [smem:[#allocation38_spill]] %s2448_s14 }
   0x6   :  { %23 = dma.hbm_to_smem %s21_s15, 16, %s1969_s19, [#allocation5] }
   0x7   :  { %28 = dma.hbm_to_smem %s26_s18, 16, %s1970_s20, [#allocation5] }
   0x8   :  { %1927 = dma.done.wait [#allocation5], 32 }
   0x9   :  { %1928 = vsyncadd [#allocation5], 4294967264 }
   0xa   :  { %31 = sfence }
   0xb   :  { %32 = vsyncpa [#allocation9], 0 }
   0xc   :  { %34 = vsyncpa [#allocation9 + $0x1], 0 }
   0xd   :  { %35 = vsyncpa [#allocation12], 0 }
   0xe   :  { %36 = vsyncpa [#allocation15], 0 }
   0xf   :  { %37 = vsyncpa [#allocation18], 0 }
  0x10   :  { %38 = vsyncpa [#allocation10], 0 }
  0x11   :  { %40 = vsyncpa [#allocation10 + $0x1], 0  ;;  %s2064_s0 = smov 0   ;;  %s2066_s21 = smov 0  }
  0x12   :  { %s2068_s1 = smov 0   ;;  %s2070_s22 = smov 0  }
  0x13 LB: > { %2466 = sst [smem:[#allocation28_spill]] %s1955_s0  ;;  %s2088_s26 = sadd.s32 4294967295, %s1967_s22   ;;  %s1967_s22 = sphi %s2070_s22, %s2504_s22   ;;  %s1963_s1 = sphi %s2068_s1, %s2506_s1   ;;  %s1959_s21 = sphi %s2066_s21, %s2508_s21   ;;  %s1955_s0 = sphi %s2064_s0, %s2507_s0  }
  0x14   : > { %2467 = sst [smem:[#allocation29_spill]] %s1963_s1  ;;  %p1399_p0 = scmp.ge.s32.totalorder %s1967_s22, 1 }
  0x15   : > { %s2468_s4 = sld [smem:[#allocation35_spill]]  ;;  %p2460_p1 = scmp.eq.s32.totalorder %s2088_s26, 0 }
  0x16   : > { %p349_p2 = scmp.lt.s32.totalorder %s1967_s22, 3  ;;  %s1971_s28 = smov [#allocation11]  }
  0x17   : > { %s362_s29 = sshll.u32 %s1971_s28, 4  ;;  %s2470_s6 = sld [smem:[#allocation36_spill]]  ;;  %s363_s29 = int_to_ptr.vmem [resolvable:$true] %s362_s29 }
  0x18   : > { %p2093_p3 = pnand %p1399_p0, %p349_p2  ;;  %s1972_s18 = smov [#allocation14]  }
  0x19   : > { %s389_s19 = sshll.u32 %s1972_s18, 4  ;;  %s2450_s20 = smov 64   ;;  %s390_s19 = int_to_ptr.vmem [resolvable:$true] %s389_s19 }
  0x1a   : > { %p1535_p4 = pneg %p2093_p3  ;;  %s2451_s23 = smov 4  }
  0x1b   : > { %s360_s25 = sshll.u32 %s2468_s4, 4  ;;  %s1398_s24 = sadd.s32 4294967294, %s1967_s22   ;;  %s361_s25 = int_to_ptr.hbm [resolvable:$true] %s360_s25 }
  0x1c   : > { %p2105_p6 = pnand %p1535_p4, %p2460_p1  ;;  %s2118_s28 = sadd.s32 1, %s1967_s22  }
  0x1d   : > { %s387_s16 = sshll.u32 %s2470_s6, 4  ;;  %2472 = sst [smem:[#allocation30_spill]] %s2118_s28  ;;  %s388_s16 = int_to_ptr.hbm [resolvable:$true] %s387_s16 }
  0x1e   : > { %1538 = dma.hbm_to_vmem [thread:$0]  (!%p2105_p6), %s361_s25, 128, %s363_s29, [#allocation12], %s2450_s20, %s2450_s20, %s2451_s23  }
  0x1f   : > { %1544 = dma.hbm_to_vmem [thread:$0]  (!%p2105_p6), %s388_s16, 16, %s390_s19, [#allocation15]  }
  0x20   : > { %s50_s30 = ssub.s32 %s1967_s22, %s2118_s28  ;;  %s53_s15 = sadd.s32 1, %s1963_s1 }
  0x21   : > { %p51_p7 = scmp.eq.s32.totalorder %s50_s30, 0  ;;  %p60_p8 = scmp.ne.s32.totalorder %s1963_s1, %s1959_s21 }
  0x22   : > { %p61_p9 = scmp.eq.s32.totalorder %s1967_s22, 0  ;;  %p66_p10 = scmp.ne.s32.totalorder %s1959_s21, %s1955_s0 }
  0x23   : > { %s2129_s18 = scalar_select %p51_p7, %s1963_s1, %s53_s15  }
  0x24   : > { %p2131_p11 = por %p61_p9, %p60_p8  ;;  %p2137_p12 = por %p2460_p1, %p66_p10 }
  0x25   : > { %2473 = sst [smem:[#allocation31_spill]] %s2129_s18  ;;  %p336_p13 = scmp.eq.s32.totalorder %s2088_s26, 1 }
  0x26   : > { %p342_p0 = scmp.eq.s32.totalorder %s1398_s24, 1  ;;  %p1567_p2 = scmp.lt.s32.totalorder %s1967_s22, 2 }
  0x27   : > { %s433_s16 = sand.u32 1, %s1967_s22   ;;  %p2144_p4 = por %p336_p13, %p60_p8 }
  0x28   : > { %p2148_p7 = por %p342_p0, %p66_p10  ;;  %s435_s15 = sand.u32 1, %s1963_s1  }
  0x29   : > { %s2476_s19 = scalar_select %p2144_p4, 1, 0 }
  0x2a   : > { %s2478_s30 = scalar_select %p2148_p7, 1, 0 }
  0x2b   : > { %2477 = sst [smem:[#allocation32_spill]] %s2476_s19  ;;  %s1406_s20 = sshll.u32 %s435_s15, 3 }
  0x2c   : > { %2479 = sst [smem:[#allocation33_spill]] %s2478_s30  ;;  %s1407_s23 = sshll.u32 %s1967_s22, 3 }
  0x2d   : > { %s2480_s2 = sld [smem:[#allocation34_spill]]  ;;  %s437_s0 = scalar_lea.vmem [#allocation8], %s1406_s20 }
  0x2e   : > { %s445_s24 = sshll.u32 %s437_s0, 4  ;;  %p2161_p8 = pnand %p1567_p2, %p2131_p11  ;;  %s446_s24 = int_to_ptr.vmem [resolvable:$true] %s445_s24 }
  0x2f   : > { %s1506_s1 = smul.u32 48, %s435_s15  ;;  %s375_s11 = sshll.u32 %s2439_s5, 4  ;;  %s376_s11 = int_to_ptr.hbm [resolvable:$true] %s375_s11 }
  0x30   : > { %s2168_s4 = scalar_lea.sflag [#allocation9], %s433_s16  ;;  %p1737_p10 = pneg %p2161_p8 }
  0x33   : > { %s441_s18 = scalar_lea.hbm %s2480_s2, %s1407_s23 }
  0x34   : > { %s443_s28 = sshll.u32 %s441_s18, 4  ;;  %s1740_s18 = scalar_lea.hbm %s2480_s2, 16  ;;  %s444_s28 = int_to_ptr.hbm [resolvable:$true] %s443_s28 }
  0x35   : > { %s1733_s6 = sshra.s32 %s444_s28, 4  ;;  %s1734_s6 = int_to_ptr.hbm [resolvable:$true] %s1733_s6 }
  0x36   : > { %s1735_s0 = scalar_lea.hbm %s1734_s6, 8  ;;  %p1741_p0 = scmp.lt.s32.totalorder %s1734_s6, %s2480_s2 }
  0x37   : > { %p1736_p9 = scmp.ne.s32.totalorder %s1734_s6, %s1735_s0  ;;  %p1742_p2 = scmp.lt.s32.totalorder %s1740_s18, %s1735_s0 }
  0x39   : > { %p1738_p11 = pnand %p1737_p10, %p1736_p9  ;;  %p1743_p5 = por %p1742_p2, %p1741_p0 }
  0x3b   : > { %p1739_p13 = pneg %p1738_p11 }
  0x3d   : > { %p1744_p1 = pnand %p1743_p5, %p1739_p13 }
  0x3f   : > { %1747 = shalt.err (!%p1744_p1)
}
  0x40   : > { %1554 = dma.hbm_to_vmem [thread:$0]  (!%p2161_p8), %s444_s28, 128, %s446_s24, %s2168_s4  }
  0x41   : > { %s471_s14 = scalar_lea.vmem [#allocation19], %s1506_s1  ;;  %s1975_s30 = smov [#allocation13]  }
  0x42   : > { %s2184_s16 = sshll.u32 %s471_s14, 4  ;;  %s377_s20 = sshll.u32 %s1975_s30, 4  ;;  %s378_s20 = int_to_ptr.vmem [resolvable:$true] %s377_s20  ;;  %s480_s16 = int_to_ptr.vmem [resolvable:$true] %s2184_s16 }
  0x43   : > { %s399_s23 = sshll.u32 %s2441_s7, 4  ;;  %s1976_s18 = smov [#allocation16]   ;;  %s400_s23 = int_to_ptr.hbm [resolvable:$true] %s399_s23 }
  0x44   : > { %1541 = dma.hbm_to_vmem [thread:$0]  (!%p2105_p6), %s376_s11, 16, %s378_s20, [#allocation12]  }
  0x45   : > { %s401_s25 = sshll.u32 %s1976_s18, 4  ;;  %s414_s1 = sshll.u32 %s2443_s9, 4  ;;  %s402_s25 = int_to_ptr.vmem [resolvable:$true] %s401_s25  ;;  %s415_s1 = int_to_ptr.hbm [resolvable:$true] %s414_s1 }
  0x46   : > { %1547 = dma.hbm_to_vmem [thread:$0]  (!%p2105_p6), %s400_s23, 16, %s402_s25, [#allocation15]  }
  0x47   : > { %s1507_s15 = smul.u32 48, %s1967_s22  ;;  %s1977_s14 = smov [#allocation17]  }
  0x48   : > { %s416_s30 = sshll.u32 %s1977_s14, 4  ;;  %s1860_s24 = scalar_lea.hbm %s2447_s13, 96  ;;  %s417_s30 = int_to_ptr.vmem [resolvable:$true] %s416_s30 }
  0x49   : > { %s476_s11 = scalar_lea.hbm %s2447_s13, %s1507_s15 }
  0x4a   : > { %1550 = dma.hbm_to_vmem [thread:$0]  (!%p2105_p6), %s415_s1, 16, %s417_s30, [#allocation18]  }
  0x4b   : > { %s477_s20 = sshll.u32 %s476_s11, 4  ;;  %s478_s20 = int_to_ptr.hbm [resolvable:$true] %s477_s20 }
  0x4c   : > { %s1853_s18 = sshra.s32 %s478_s20, 4  ;;  %s1854_s18 = int_to_ptr.hbm [resolvable:$true] %s1853_s18 }
  0x4d   : > { %s1855_s28 = scalar_lea.hbm %s1854_s18, 48  ;;  %p1861_p11 = scmp.lt.s32.totalorder %s1854_s18, %s2447_s13 }
  0x4e   : > { %p1856_p1 = scmp.ne.s32.totalorder %s1854_s18, %s1855_s28  ;;  %p1862_p13 = scmp.lt.s32.totalorder %s1860_s24, %s1855_s28 }
  0x50   : > { %p1858_p5 = pnand %p1856_p1, %p1737_p10  ;;  %p1863_p6 = por %p1862_p13, %p1861_p11 }
  0x52   : > { %p1859_p9 = pneg %p1858_p5 }
  0x54   : > { %p1864_p0 = pnand %p1863_p6, %p1859_p9 }
  0x56   : > { %1867 = shalt.err (!%p1864_p0)
}
  0x57   : > { %s2482_s17 = smov 4   ;;  %s2483_s1 = smov 64  }
  0x58   : > { %1557 = dma.hbm_to_vmem [thread:$0]  (!%p2161_p8), %s478_s20, 768, %s480_s16, %s2168_s4, %s2483_s1, %s2483_s1, %s2482_s17  }
  0x59   : > { %491 = sbr.rel (%p2093_p3) target bundleno = 1555 (0x613), region = 68  ;;  %s493_s15 = sand.u32 (!%p2093_p3), 1, %s2088_s26  }
  0x5a   : > { %s2222_s2 = sand.u32 (!%p2093_p3), 1, %s1959_s21   ;;  %s494_s6 = scalar_lea.sflag (!%p2093_p3), [#allocation9], %s493_s15 }
  0x5b   : > { %s1410_s30 = sshll.u32 (!%p2093_p3), %s2222_s2, 3 }
  0x5c   : > { %s497_s19 = scalar_lea.vmem (!%p2093_p3), [#allocation8], %s1410_s30 }
  0x5e   : > { %1930 = dma.done.wait (%p2137_p12), %s494_s6, 128  }
  0x5f   : > { %1932 = vsyncadd (%p2137_p12), %s494_s6, 4294967168  ;;  %p2484_p8 = scmp.eq.s32.totalorder %s2088_s26, 0 }
  0x61   : > { %1934 = dma.done.wait (%p2484_p8), [#allocation12], 144   ;;  %p2485_p3 = pmov %p2484_p8 }
  0x63   : > { %1936 = vsyncadd (%p2485_p3), [#allocation12], 4294967152  ;;  %p2486_p10 = pmov %p2485_p3 }
  0x64   : > { %p2487_p2 = pmov %p2485_p3 }
  0x65   : > { %1938 = dma.done.wait (%p2486_p10), [#allocation15], 32  }
  0x66   : > { %1940 = vsyncadd (%p2487_p2), [#allocation15], 4294967264  ;;  %p2488_p1 = pmov %p2487_p2 }
  0x68   : > { %1942 = dma.done.wait (%p2488_p1), [#allocation18], 16   ;;  %p2489_p5 = pmov %p2488_p1 }
  0x69   : > { %s1508_s27 = smul.u32 48, %s2222_s2 }
  0x6a   : > { %1944 = vsyncadd (%p2489_p5), [#allocation18], 4294967280 }
  0x6b   : > { %s2244_s4 = scalar_lea.vmem [#allocation19], %s1508_s27 }
  0x6c   : > { %1946 = dma.done.wait (%p2137_p12), %s494_s6, 768  }
  0x6d   : > { %1948 = vsyncadd (%p2137_p12), %s494_s6, 4294966528  ;;  %p588_p9 = scmp.lt.s32.totalorder %s2088_s26, 1  ;;  %v598_v2 = vld [vmem:[%s497_s19] sm:$0xff]  ;;  %s1978_s24 = smov 8   ;;  %vm625_vm0 = vcmask 261120   ;;  %v1495_v13 = vld [vmem:[#allocation11] sm:$0xff] }
  0x6e   : > { %v599_v3 = vunpack.c.0.s8 %v598_v2  ;;  %v600_v4 = vunpack.c.1.s8 %v598_v2  ;;  %v601_v8 = vunpack.c.2.s8 %v598_v2  ;;  %v602_v9 = vunpack.c.3.s8 %v598_v2  ;;  %700 = vmatpush.bf16.msra.mxu1 %v1495_v13  ;;  %v1623_v32 = vld [vmem:[#allocation13] ss:$0 sm:$0xff]  ;;  %s1979_s14 = smov 96   ;;  %v1624_v46 = vld [vmem:[#allocation14] ss:$0 sm:$0xff]  ;;  %s1980_s17 = smov 32  }
  0x6f   : > { %s589_s16 = scalar_select %p588_p9, %s2088_s26, 1  ;;  %vm669_vm1 = vcmask 64512   ;;  %vm688_vm2 = vcmask 130048   ;;  %v1625_v48 = vld [vmem:[#allocation16] ss:$0 sm:$0xff]  ;;  %v1497_v13 = vld [vmem:[%s2442_s8 + $0x8] sm:$0xff] }
  0x70   : > { %v603_v5 = vcvt.s32.f32 %v599_v3  ;;  %v604_v6 = vcvt.s32.f32 %v600_v4  ;;  %v605_v10 = vcvt.s32.f32 %v601_v8  ;;  %v606_v11 = vcvt.s32.f32 %v602_v9  ;;  %s2490_s25 = sld [smem:[#allocation37_spill]] }
  0x71   : > { %s1492_s0 = sshll.u32 %s589_s16, 4  ;;  %s1419_s28 = sshll.u32 %s589_s16, 3  ;;  %vm847_vm3 = vcmask 523264   ;;  %vm1015_vm6 = vcmask 7168  }
  0x72   : > { %s592_s18 = scalar_lea.vmem %s2437_s3, %s1492_s0  ;;  %s2258_s29 = scalar_lea.vmem %s2446_s12, %s1419_s28  ;;  %v2260_v7 = vpack.c.bf16 %v604_v6, %v603_v5  ;;  %v2264_v12 = vpack.c.bf16 %v606_v11, %v605_v10  ;;  %v1499_v10 = vld [vmem:[%s2442_s8 + $0x18] sm:$0xff]  ;;  %v1498_v11 = vld [vmem:[%s2442_s8 + $0x10] sm:$0xff] }
  0x73   : > { %v1494_v0 = vld [vmem:[%s592_s18 + $0x8] sm:$0xff]  ;;  %v1493_v1 = vld [vmem:[%s592_s18] sm:$0xff]  ;;  %856 = vmatpush.bf16.msra.mxu3 %v1499_v10  ;;  %s2318_s1 = sld [smem:[#allocation6 + $0x1]]  ;;  %s587_s28 = scalar_lea.vmem [#allocation20], %s1410_s30 }
  0x74   : > { %638 = vmatpush.bf16.msra.mxu0 %v1494_v0  ;;  %665 = vrot.lane.b32.xlu0 %v1493_v1, %s1978_s24  ;;  %s2320_s15 = sld [smem:[#allocation7 + $0x1]]  ;;  %s1229_s23 = sshll.u32 %s587_s28, 4  ;;  %s1230_s23 = int_to_ptr.vmem [resolvable:$true] %s1229_s23 }
  0x75   : > { %s2499_s11 = sld [smem:[#allocation38_spill]] }
  0x77   : > { %857 = vmatpush.bf16.msra.mxu3 %v1498_v11 }
  0x78   : > { %639 = vmatpush.bf16.msra.mxu0 %v1493_v1 }
  0x79   : > { %s1081_s19 = scalar_lea.vmem [#allocation2], %s2318_s1  ;;  %s1084_s27 = scalar_lea.vmem [#allocation3], %s2318_s1 }
  0x7b   : > { %1428 = vmatmul.msk.bf16.vlgmr.msra.gmra.mxu0 %vm625_vm0, %v2260_v7  ;;  %858 = vmatpush.bf16.msra.mxu3 %v1497_v13 }
  0x7c   : > { %667 = vrot.lane.b32.xlu0 %v1494_v0, %s1978_s24  ;;  %s2316_s24 = sld [smem:[#allocation6]] }
  0x82   : > { %s1029_s6 = scalar_lea.vmem [#allocation2], %s2316_s24  ;;  %s1032_s16 = scalar_lea.vmem [#allocation3], %s2316_s24 }
  0x83   : > { %s1217_s24 = scalar_lea.sflag [#allocation10], %s2222_s2 }
  0x8b   : > { %1429 = vmatmul.msk.bf16.gmra.mxu0 %vm625_vm0, %v2264_v12 }
  0xe6   : > { %v666_v20 = vpop.permute.xlu0 %665 }
  0xee   : > { %v668_v29 = vpop.permute.xlu0 %667 }
  0xf8   : > { %v641_v14 = vpop.f32.mrf.mxu0 }
  0xf9   : > { %v651_v15 = vpack.c.bf16 %v641_v14, %v641_v14 }
  0xfb   : > { %v659_v18 = vunpack.c.l.b16 %v651_v15 }
 0x100   : > { %v643_v16 = vpop.f32.mrf.mxu0 }
 0x101   : > { %v652_v17 = vpack.c.bf16 %v643_v16, %v643_v16 }
 0x103   : > { %v660_v19 = vunpack.c.l.b16 %v652_v17 }
 0x105   : > { %v663_v21 = vpack.c.b16 %v660_v19, %v659_v18 }
 0x107   : > { %v672_v22 = vsel %vm669_vm1, %v663_v21, %v666_v20 }
 0x108   : > { %v646_v23 = vpop.f32.mrf.mxu0  ;;  %1434 = vmatmul.msk.bf16.vlgmr.msra.gmra.mxu1 %vm688_vm2, %v672_v22 }
 0x109   : > { %v653_v24 = vpack.c.bf16 %v646_v23, %v646_v23 }
 0x10b   : > { %v661_v27 = vunpack.c.l.b16 %v653_v24 }
 0x110   : > { %v648_v25 = vpop.f32.mrf.mxu0 }
 0x111   : > { %v654_v26 = vpack.c.bf16 %v648_v25, %v648_v25 }
 0x113   : > { %v662_v28 = vunpack.c.l.b16 %v654_v26 }
 0x115   : > { %v664_v30 = vpack.c.b16 %v662_v28, %v661_v27 }
 0x117   : > { %v675_v31 = vsel %vm669_vm1, %v664_v30, %v668_v29 }
 0x118   : > { %1435 = vmatmul.msk.bf16.gmra.mxu1 %vm688_vm2, %v675_v31 }
 0x185   : > { %v702_v33 = vpop.f32.mrf.mxu1 }
 0x186   : > { %v703_v34 = vadd.f32 %v1623_v32, %v702_v33 }
 0x188   : > { %v712_v35 = vmax.f32 %v703_v34, 0.0 }
 0x18a   : > { %720 = vrot.lane.b32.xlu2 %v712_v35, %s1979_s14 }
 0x18d   : > { %v704_v36 = vpop.f32.mrf.mxu1 }
 0x18e   : > { %v705_v37 = vadd.f32 %v1623_v32, %v704_v36 }
 0x190   : > { %v713_v38 = vmax.f32 %v705_v37, 0.0 }
 0x192   : > { %722 = vrot.lane.b32.xlu2 %v713_v38, %s1979_s14 }
 0x195   : > { %v707_v39 = vpop.f32.mrf.mxu1 }
 0x196   : > { %v708_v40 = vadd.f32 %v1623_v32, %v707_v39 }
 0x198   : > { %v714_v41 = vmax.f32 %v708_v40, 0.0 }
 0x19a   : > { %724 = vrot.lane.b32.xlu1 %v714_v41, %s1979_s14 }
 0x19d   : > { %v709_v42 = vpop.f32.mrf.mxu1 }
 0x19e   : > { %v710_v43 = vadd.f32 %v1623_v32, %v709_v42  ;;  %v1626_v32 = vld [vmem:[#allocation17] ss:$0 sm:$0xff] }
 0x1a0   : > { %v715_v44 = vmax.f32 %v710_v43, 0.0 }
 0x1a2   : > { %726 = vrot.lane.b32.xlu1 %v715_v44, %s1979_s14 }
 0x1e4   : > { %v721_v45 = vpop.permute.xlu2 %720 }
 0x1e5   : > { %v732_v47 = vadd.f32 %v721_v45, %v712_v35  ;;  %v1627_v45 = vld [vmem:[%s2444_s10] ss:$0 sm:$0xff] }
 0x1e7   : > { %v740_v49 = vmul.f32 %v1624_v46, %v732_v47 }
 0x1e9   : > { %v748_v51 = vadd.f32 %v1625_v48, %v740_v49 }
 0x1eb   : > { %v752_v54 = vpack.c.bf16 %v748_v51, %v748_v51 }
 0x1ec   : > { %v723_v50 = vpop.permute.xlu2 %722 }
 0x1ed   : > { %v733_v52 = vadd.f32 %v723_v50, %v713_v38  ;;  %v760_v57 = vunpack.c.l.b16 %v752_v54  ;;  %v1629_v50 = vld [vmem:[%s2258_s29] ss:$0 sm:$0xff] }
 0x1ef   : > { %v741_v53 = vmul.f32 %v1624_v46, %v733_v52 }
 0x1f1   : > { %v749_v55 = vadd.f32 %v1625_v48, %v741_v53 }
 0x1f3   : > { %v753_v56 = vpack.c.bf16 %v749_v55, %v749_v55 }
 0x1f5   : > { %v761_v58 = vunpack.c.l.b16 %v753_v56 }
 0x1f7   : > { %v764_v59 = vpack.c.b16 %v761_v58, %v760_v57 }
 0x1f9   : > { %801 = vrot.lane.b32.xlu0 %v764_v59, %s1980_s17 }
 0x20c   : > { %v725_v60 = vpop.permute.xlu1 %724 }
 0x20d   : > { %v734_v61 = vadd.f32 %v725_v60, %v714_v41 }
 0x20f   : > { %v742_v62 = vmul.f32 %v1624_v46, %v734_v61 }
 0x211   : > { %v750_v0 = vadd.f32 %v1625_v48, %v742_v62 }
 0x213   : > { %v754_v3 = vpack.c.bf16 %v750_v0, %v750_v0 }
 0x214   : > { %v727_v63 = vpop.permute.xlu1 %726 }
 0x215   : > { %v735_v1 = vadd.f32 %v727_v63, %v715_v44  ;;  %v762_v6 = vunpack.c.l.b16 %v754_v3 }
 0x217   : > { %v743_v2 = vmul.f32 %v1624_v46, %v735_v1 }
 0x219   : > { %v751_v4 = vadd.f32 %v1625_v48, %v743_v2  ;;  %v1628_v48 = vld [vmem:[%s2490_s25] ss:$0 sm:$0xff] }
 0x21b   : > { %v755_v5 = vpack.c.bf16 %v751_v4, %v751_v4 }
 0x21d   : > { %v763_v8 = vunpack.c.l.b16 %v755_v5 }
 0x21f   : > { %v765_v9 = vpack.c.b16 %v763_v8, %v762_v6 }
 0x221   : > { %803 = vrot.lane.b32.xlu1 %v765_v9, %s1980_s17  ;;  %774 = vmatpush.bf16.msra.mxu2 %v765_v9  ;;  %v1630_v9 = vld [vmem:[%s2258_s29 + $0x1] ss:$0 sm:$0xff] }
 0x225   : > { %775 = vmatpush.bf16.msra.mxu2 %v764_v59 }
 0x228   : > { %1436 = vmatmul.msk.bf16.vlgmr.msra.gmra.mxu2 %vm625_vm0, %v2260_v7  ;;  %v1496_v7 = vld [vmem:[%s2442_s8] sm:$0xff] }
 0x229   : > { %859 = vmatpush.bf16.msra.mxu3 %v1496_v7 }
 0x238   : > { %1437 = vmatmul.msk.bf16.gmra.mxu2 %vm625_vm0, %v2264_v12  ;;  %v1981_v12 = vmov 0.0  }
 0x239   : > { %1020 = vst.msk [vmem:[#allocation4] sm:$0xff] %vm847_vm3, %v1981_v12 }
 0x26b   : > { %v802_v21 = vpop.permute.xlu0 %801 }
 0x293   : > { %v804_v30 = vpop.permute.xlu1 %803 }
 0x2ab   : > { %v777_v14 = vpop.f32.mrf.mxu2 }
 0x2ac   : > { %v787_v15 = vpack.c.bf16 %v777_v14, %v777_v14 }
 0x2ae   : > { %v795_v18 = vunpack.c.l.b16 %v787_v15 }
 0x2b3   : > { %v779_v16 = vpop.f32.mrf.mxu2 }
 0x2b4   : > { %v788_v17 = vpack.c.bf16 %v779_v16, %v779_v16 }
 0x2b6   : > { %v796_v19 = vunpack.c.l.b16 %v788_v17 }
 0x2b8   : > { %v799_v20 = vpack.c.b16 %v796_v19, %v795_v18 }
 0x2ba   : > { %v807_v22 = vsel %vm625_vm0, %v799_v20, %v802_v21 }
 0x2bb   : > { %v782_v23 = vpop.f32.mrf.mxu2  ;;  %1454 = vmatmul.msk.bf16.vlgmr.msra.gmra.mxu3 %vm847_vm3, %v807_v22 }
 0x2bc   : > { %v789_v24 = vpack.c.bf16 %v782_v23, %v782_v23 }
 0x2be   : > { %v797_v27 = vunpack.c.l.b16 %v789_v24 }
 0x2c3   : > { %v784_v25 = vpop.f32.mrf.mxu2 }
 0x2c4   : > { %v790_v26 = vpack.c.bf16 %v784_v25, %v784_v25 }
 0x2c6   : > { %v798_v28 = vunpack.c.l.b16 %v790_v26 }
 0x2c8   : > { %v800_v29 = vpack.c.b16 %v798_v28, %v797_v27 }
 0x2ca   : > { %v810_v31 = vsel %vm625_vm0, %v800_v29, %v804_v30 }
 0x2cb   : > { %1455 = vmatmul.msk.bf16.gmra.mxu3 %vm847_vm3, %v810_v31 }
 0x33e   : > { %v861_v33 = vpop.f32.mrf.mxu3 }
 0x33f   : > { %v862_v34 = vadd.f32 %v1626_v32, %v861_v33  ;;  %v1982_v33 = vmov 0  }
 0x340   : > { %1622 = vset.pattern.permute.xlu2 %v1982_v33  ;;  %1621 = vset.pattern.permute.xlu1 %v1982_v33 }
 0x341   : > { %v871_v35 = vmax.f32 %v862_v34, 0.0  ;;  %v1021_v34 = vlaneseq  ;;  %1620 = vset.pattern.permute.xlu0 %v1982_v33 }
 0x343   : > { %879 = vrot.lane.b32.xlu2 %v871_v35, %s1979_s14 }
 0x346   : > { %v863_v36 = vpop.f32.mrf.mxu3 }
 0x347   : > { %v864_v37 = vadd.f32 %v1626_v32, %v863_v36 }
 0x349   : > { %v872_v38 = vmax.f32 %v864_v37, 0.0 }
 0x34b   : > { %881 = vrot.lane.b32.xlu0 %v872_v38, %s1979_s14 }
 0x34e   : > { %v866_v39 = vpop.f32.mrf.mxu3 }
 0x34f   : > { %v867_v40 = vadd.f32 %v1626_v32, %v866_v39 }
 0x351   : > { %v873_v41 = vmax.f32 %v867_v40, 0.0  ;;  %v1022_v40 = vshrl.u32 %v1021_v34, 7 }
 0x353   : > { %883 = vrot.lane.b32.xlu1 %v873_v41, %s1979_s14 }
 0x356   : > { %v868_v42 = vpop.f32.mrf.mxu3 }
 0x357   : > { %v869_v43 = vadd.f32 %v1626_v32, %v868_v42 }
 0x359   : > { %v874_v44 = vmax.f32 %v869_v43, 0.0 }
 0x35b   : > { %885 = vrot.lane.b32.xlu2 %v874_v44, %s1979_s14  ;;  %s1025_s14 = sld [smem:[#allocation7]] }
 0x39d   : > { %v880_v46 = vpop.permute.xlu2 %879 }
 0x39e   : > { %v891_v47 = vadd.f32 %v880_v46, %v871_v35 }
 0x3a0   : > { %v899_v49 = vmul.f32 %v1627_v45, %v891_v47  ;;  %v1026_v47 = vstv %s1025_s14 }
 0x3a1   : > { %vm2322_vm12 = vcmp.lt.s32.totalorder %v1022_v40, %v1026_v47 }
 0x3a2   : > { %v907_v51 = vadd.f32 %v1628_v48, %v899_v49 }
 0x3a4   : > { %v914_v52 = vmul.f32 %v1629_v50, %v907_v51  ;;  %1011 = vst.msk [vmem:[#allocation2] sm:$0xff] %vm625_vm0, %v907_v51 }
 0x3a6   : > { %v918_v53 = vsel %vm625_vm0, %v914_v52, 0.0 }
 0x3a7   : > { %919 = vadd.xlane.f32.xlu0 %v918_v53 }
 0x3b5   : > { %v886_v54 = vpop.permute.xlu2 %885 }
 0x3b6   : > { %v894_v55 = vadd.f32 %v886_v54, %v874_v44  ;;  %v1023_v44 = vadd.s32 8, %v1022_v40 }
 0x3b8   : > { %v902_v56 = vmul.f32 %v1627_v45, %v894_v55  ;;  %vm2326_vm13 = vcmp.lt.s32.totalorder %v1023_v44, %v1026_v47  ;;  %v1501_v47 = vld [vmem:[%s2244_s4 + $0x8] sm:$0xff] }
 0x3ba   : > { %v910_v57 = vadd.f32 %v1628_v48, %v902_v56 }
 0x3bc   : > { %1014 = vst.msk [vmem:[#allocation2 + $0x18] sm:$0xff] %vm625_vm0, %v910_v57  ;;  %v917_v6 = vmul.f32 %v1629_v50, %v910_v57 }
 0x3bd   : > { %v882_v58 = vpop.permute.xlu0 %881 }
 0x3be   : > { %v892_v59 = vadd.f32 %v882_v58, %v872_v38  ;;  %v927_v8 = vsel %vm625_vm0, %v917_v6, 0.0 }
 0x3c0   : > { %v900_v60 = vmul.f32 %v1627_v45, %v892_v59 }
 0x3c2   : > { %v908_v61 = vadd.f32 %v1628_v48, %v900_v60 }
 0x3c4   : > { %v915_v62 = vmul.f32 %v1629_v50, %v908_v61  ;;  %1012 = vst.msk [vmem:[#allocation2 + $0x8] sm:$0xff] %vm625_vm0, %v908_v61 }
 0x3c5   : > { %v884_v63 = vpop.permute.xlu1 %883 }
 0x3c6   : > { %v893_v0 = vadd.f32 %v884_v63, %v873_v41  ;;  %v921_v1 = vsel %vm625_vm0, %v915_v62, 0.0 }
 0x3c7   : > { %922 = vadd.xlane.f32.xlu1 %v921_v1 }
 0x3c8   : > { %v901_v2 = vmul.f32 %v1627_v45, %v893_v0 }
 0x3ca   : > { %v909_v3 = vadd.f32 %v1628_v48, %v901_v2  ;;  %v1078_v2 = vstv %s2320_s15 }
 0x3cc   : > { %v916_v4 = vmul.f32 %v1629_v50, %v909_v3  ;;  %1013 = vst.msk [vmem:[#allocation2 + $0x10] sm:$0xff] %vm625_vm0, %v909_v3 }
 0x3ce   : > { %v924_v5 = vsel %vm625_vm0, %v916_v4, 0.0 }
 0x3cf   : > { %925 = vadd.xlane.f32.xlu2 %v924_v5 }
 0x3d3   : > { %v2331_v55 = vld [vmem:[%s1029_s6] sm:$0xff]  ;;  %v2333_v56 = vld [vmem:[%s1029_s6 + $0x8] sm:$0xff] }
 0x3d4   : > { %v1058_v61 = vsel %vm2322_vm12, %v2331_v55, -1e+30  ;;  %v1059_v62 = vsel %vm2326_vm13, %v2333_v56, -1e+30 }
 0x3d5   : > { %v1060_v3 = vsel %vm625_vm0, %v1058_v61, -inf  ;;  %v1061_v4 = vsel %vm625_vm0, %v1059_v62, -inf }
 0x3d7   : > { %928 = vadd.xlane.f32.xlu2 %v927_v8 }
 0x41a   : > { %v920_v10 = vpop.xlane.xlu0 %919 }
 0x41b   : > { %v931_v11 = vadd.f32 %v1630_v9, %v920_v10 }
 0x41d   : > { %v1456_v13 = vmul.f32 -1.442695, %v931_v11  ;;  %v2354_v11 = vld [vmem:[%s1081_s19] sm:$0xff] }
 0x41f   : > { %1633 = vpow2.f32 %v1456_v13  ;;  %v2356_v13 = vld [vmem:[%s1081_s19 + $0x8] sm:$0xff] }
 0x425   : > { %v1634_v7 = vpop.eup %1633 }
 0x426   : > { %v947_v12 = vadd.f32 1.0, %v1634_v7 }
 0x428   : > { %1635 = vrcp.f32 %v947_v12  ;;  %v962_v17 = vand.u32 2147483648, %v947_v12  ;;  %v960_v19 = vand.u32 2147483647, %v947_v12  ;;  %vm956_vm5 = vweird.f32 %v947_v12 }
 0x42a   : > { %v963_v21 = vor.u32 1.1754944e-38, %v962_v17  ;;  %vm961_vm8 = vcmp.eq.f32.partialorder %v960_v19, 8.507059e+37 }
 0x42e   : > { %v1636_v14 = vpop.eup %1635 }
 0x42f   : > { %v952_v15 = vmul.f32 %v1636_v14, %v947_v12  ;;  %vm957_vm4 = vweird.f32 %v1636_v14 }
 0x430   : > { %vm958_vm7 = vmor %vm956_vm5, %vm957_vm4  ;;  %vm2345_vm4 = vcmp.lt.s32.totalorder %v1022_v40, %v1078_v2  ;;  %vm2349_vm5 = vcmp.lt.s32.totalorder %v1023_v44, %v1078_v2  ;;  %v1504_v2 = vld [vmem:[%s2244_s4 + $0x20] sm:$0xff] }
 0x431   : > { %v953_v16 = vsub.f32 1.0, %v952_v15  ;;  %v1110_v17 = vsel %vm2345_vm4, %v2354_v11, -1e+30 }
 0x433   : > { %v954_v18 = vmul.f32 %v1636_v14, %v953_v16 }
 0x435   : > { %v955_v20 = vadd.f32 %v1636_v14, %v954_v18  ;;  %v1111_v18 = vsel %vm2349_vm5, %v2356_v13, -1e+30 }
 0x437   : > { %v959_v22 = vsel %vm958_vm7, %v1636_v14, %v955_v20  ;;  %v1062_v14 = vmax.f32 %v1060_v3, %v1061_v4 }
 0x438   : > { %v964_v23 = vsel %vm961_vm8, %v963_v21, %v959_v22 }
 0x439   : > { %1016 = vst.msk [vmem:[#allocation3] sm:$0xff] %vm1015_vm6, %v964_v23  ;;  %v1063_v22 = vrot.slane %v1062_v14, 4  ;;  %v1112_v23 = vsel %vm625_vm0, %v1110_v17, -inf }
 0x43a   : > { %v923_v24 = vpop.xlane.xlu1 %922 }
 0x43b   : > { %v932_v25 = vadd.f32 %v1630_v9, %v923_v24  ;;  %v1113_v24 = vsel %vm625_vm0, %v1111_v18, -inf }
 0x43d   : > { %v1457_v26 = vmul.f32 -1.442695, %v932_v25 }
 0x43f   : > { %1637 = vpow2.f32 %v1457_v26 }
 0x442   : > { %v926_v27 = vpop.xlane.xlu2 %925 }
 0x443   : > { %v933_v28 = vadd.f32 %v1630_v9, %v926_v27 }
 0x445   : > { %v1638_v29 = vpop.eup %1637  ;;  %v1458_v30 = vmul.f32 -1.442695, %v933_v28  ;;  %v1064_v28 = vmax.f32 %v1062_v14, %v1063_v22 }
 0x446   : > { %v948_v31 = vadd.f32 1.0, %v1638_v29  ;;  %v1114_v29 = vmax.f32 %v1112_v23, %v1113_v24  ;;  %v1631_v23 = vld [vmem:[%s2258_s29 + $0x2] ss:$0 sm:$0xff] }
 0x447   : > { %1639 = vpow2.f32 %v1458_v30 }
 0x448   : > { %1641 = vrcp.f32 %v948_v31  ;;  %v977_v43 = vand.u32 2147483648, %v948_v31  ;;  %v975_v46 = vand.u32 2147483647, %v948_v31  ;;  %vm971_vm10 = vweird.f32 %v948_v31 }
 0x44a   : > { %v929_v32 = vpop.xlane.xlu2 %928  ;;  %v978_v51 = vor.u32 1.1754944e-38, %v977_v43  ;;  %vm976_vm14 = vcmp.eq.f32.partialorder %v975_v46, 8.507059e+37  ;;  %v1502_v46 = vld [vmem:[%s2244_s4 + $0x10] sm:$0xff] }
 0x44b   : > { %v934_v35 = vadd.f32 %v1630_v9, %v929_v32  ;;  %v1115_v32 = vrot.slane %v1114_v29, 4 }
 0x44d   : > { %v1640_v36 = vpop.eup %1639  ;;  %v1459_v37 = vmul.f32 -1.442695, %v934_v35  ;;  %v1116_v34 = vmax.f32 %v1114_v29, %v1115_v32  ;;  %v1632_v29 = vld [vmem:[%s2258_s29 + $0x3] ss:$0 sm:$0xff]  ;;  %s1903_s29 = scalar_lea.hbm %s2499_s11, 16 }
 0x44e   : > { %v1642_v38 = vpop.eup %1641  ;;  %v949_v39 = vadd.f32 1.0, %v1640_v36 }
 0x44f   : > { %v967_v41 = vmul.f32 %v1642_v38, %v948_v31  ;;  %1643 = vpow2.f32 %v1459_v37  ;;  %vm972_vm9 = vweird.f32 %v1642_v38  ;;  %v1065_v31 = vrot.slane %v1064_v28, 2 }
 0x450   : > { %1645 = vrcp.f32 %v949_v39  ;;  %vm973_vm11 = vmor %vm971_vm10, %vm972_vm9  ;;  %v992_v63 = vand.u32 2147483648, %v949_v39  ;;  %v990_v1 = vand.u32 2147483647, %v949_v39  ;;  %vm986_vm1 = vweird.f32 %v949_v39 }
 0x451   : > { %v968_v42 = vsub.f32 1.0, %v967_v41  ;;  %v1066_v33 = vmax.f32 %v1064_v28, %v1065_v31 }
 0x452   : > { %v993_v8 = vor.u32 1.1754944e-38, %v992_v63  ;;  %vm991_vm7 = vcmp.eq.f32.partialorder %v990_v1, 8.507059e+37 }
 0x453   : > { %v969_v45 = vmul.f32 %v1642_v38, %v968_v42 }
 0x455   : > { %v1644_v48 = vpop.eup %1643  ;;  %v970_v49 = vadd.f32 %v1642_v38, %v969_v45  ;;  %v1503_v45 = vld [vmem:[%s2244_s4 + $0x18] sm:$0xff] }
 0x456   : > { %v1646_v50 = vpop.eup %1645  ;;  %v950_v52 = vadd.f32 1.0, %v1644_v48  ;;  %1175 = vmatpush.bf16.msrb.mxu1 %v1503_v45  ;;  %v1500_v48 = vld [vmem:[%s2244_s4] sm:$0xff] }
 0x457   : > { %v974_v57 = vsel %vm973_vm11, %v1642_v38, %v970_v49  ;;  %v982_v58 = vmul.f32 %v1646_v50, %v949_v39  ;;  %vm987_vm15 = vweird.f32 %v1646_v50  ;;  %v1067_v38 = vrot.slane %v1066_v33, 1 }
 0x458   : > { %v979_v59 = vsel %vm976_vm14, %v978_v51, %v974_v57  ;;  %1647 = vrcp.f32 %v950_v52  ;;  %vm988_vm2 = vmor %vm986_vm1, %vm987_vm15  ;;  %v1007_v19 = vand.u32 2147483648, %v950_v52  ;;  %v1005_v21 = vand.u32 2147483647, %v950_v52 }
 0x459   : > { %1017 = vst.msk [vmem:[#allocation3 + $0x8] sm:$0xff] %vm1015_vm6, %v979_v59  ;;  %v983_v60 = vsub.f32 1.0, %v982_v58  ;;  %vm1001_vm9 = vweird.f32 %v950_v52  ;;  %v1117_v39 = vrot.slane %v1116_v34, 2  ;;  %v1068_v40 = vmax.f32 %v1066_v33, %v1067_v38 }
 0x45a   : > { %v1008_v26 = vor.u32 1.1754944e-38, %v1007_v19  ;;  %vm1006_vm11 = vcmp.eq.f32.partialorder %v1005_v21, 8.507059e+37  ;;  %1176 = vmatpush.bf16.msrb.mxu1 %v1502_v46 }
 0x45b   : > { %v984_v0 = vmul.f32 %v1646_v50, %v983_v60  ;;  %v1118_v41 = vmax.f32 %v1116_v34, %v1117_v39 }
 0x45d   : > { %v985_v5 = vadd.f32 %v1646_v50, %v984_v0  ;;  %v1119_v43 = vrot.slane %v1118_v41, 1  ;;  %v1505_v0 = vld [vmem:[%s2244_s4 + $0x28] sm:$0xff]  ;;  %s1489_s4 = sshll.u32 %s2088_s26, 3 }
 0x45e   : > { %v1648_v6 = vpop.eup %1647  ;;  %1177 = vmatpush.bf16.msrb.mxu1 %v1501_v47  ;;  %1208 = vmatpush.bf16.msrb.mxu0 %v1505_v0  ;;  %s1227_s18 = scalar_lea.hbm %s2499_s11, %s1489_s4 }
 0x45f   : > { %v989_v7 = vsel %vm988_vm2, %v1646_v50, %v985_v5  ;;  %v997_v12 = vmul.f32 %v1648_v6, %v950_v52  ;;  %vm1002_vm8 = vweird.f32 %v1648_v6  ;;  %v1120_v44 = vmax.f32 %v1118_v41, %v1119_v43  ;;  %s1231_s25 = sshll.u32 %s1227_s18, 4  ;;  %s1232_s25 = int_to_ptr.hbm [resolvable:$true] %s1231_s25 }
 0x460   : > { %v994_v15 = vsel %vm991_vm7, %v993_v8, %v989_v7  ;;  %vm1003_vm10 = vmor %vm1001_vm9, %vm1002_vm8  ;;  %s1897_s14 = sshra.s32 %s1232_s25, 4  ;;  %s1898_s14 = int_to_ptr.hbm [resolvable:$true] %s1897_s14 }
 0x461   : > { %1018 = vst.msk [vmem:[#allocation3 + $0x10] sm:$0xff] %vm1015_vm6, %v994_v15  ;;  %v998_v16 = vsub.f32 1.0, %v997_v12  ;;  %s1899_s1 = scalar_lea.hbm %s1898_s14, 8  ;;  %p1904_p6 = scmp.lt.s32.totalorder %s1898_s14, %s2499_s11 }
 0x462   : > { %1178 = vmatpush.bf16.msrb.mxu1 %v1500_v48  ;;  %1209 = vmatpush.bf16.msrb.mxu0 %v1504_v2  ;;  %p1900_p12 = scmp.ne.s32.totalorder %s1898_s14, %s1899_s1  ;;  %p1905_p0 = scmp.lt.s32.totalorder %s1903_s29, %s1899_s1 }
 0x463   : > { %v999_v20 = vmul.f32 %v1648_v6, %v998_v16 }
 0x464   : > { %p1901_p11 = pnand %p1900_p12, %p2144_p4  ;;  %p1906_p8 = por %p1905_p0, %p1904_p6 }
 0x465   : > { %v1000_v25 = vadd.f32 %v1648_v6, %v999_v20 }
 0x466   : > { %p1902_p13 = pneg %p1901_p11 }
 0x467   : > { %v1004_v27 = vsel %vm1003_vm10, %v1648_v6, %v1000_v25 }
 0x468   : > { %v1009_v30 = vsel %vm1006_vm11, %v1008_v26, %v1004_v27  ;;  %p1907_p3 = pnand %p1906_p8, %p1902_p13 }
 0x469   : > { %1019 = vst.msk [vmem:[#allocation3 + $0x18] sm:$0xff] %vm1015_vm6, %v1009_v30  ;;  %vm1074_vm6 = vcmask 516096  }
 0x470   : > { %v1085_v35 = vld [vmem:[%s1084_s27] sm:$0xff]  ;;  %v1034_v36 = vld [vmem:[%s1032_s16 + $0x8] sm:$0xff] }
 0x471   : > { %v1033_v37 = vld [vmem:[%s1032_s16] sm:$0xff]  ;;  %1089 = vperm.xlu2 %1622, %v1085_v35   ;;  %1042 = vperm.xlu1 %1621, %v1034_v36   ;;  %v1086_v42 = vld [vmem:[%s1084_s27 + $0x8] sm:$0xff] }
 0x472   : > { %1037 = vperm.xlu0 %1620, %v1033_v37  }
 0x479   : > { %1070 = vrot.lane.b32.xlu2 %v1068_v40, %s1980_s17  ;;  %1094 = vperm.xlu1 %1621, %v1086_v42  }
 0x481   : > { %1122 = vrot.lane.b32.xlu1 %v1120_v44, %s1980_s17 }
 0x4cb   : > { %v1090_v52 = vpop.permute.xlu2 %1089 }
 0x4cc   : > { %v1097_v61 = vmul.f32 %v1090_v52, %v2354_v11 }
 0x4d3   : > { %v1071_v15 = vpop.permute.xlu2 %1070 }
 0x4e3   : > { %v1043_v49 = vpop.permute.xlu1 %1042 }
 0x4e4   : > { %v1046_v50 = vmul.f32 %v1043_v49, %v2333_v56  ;;  %v1038_v51 = vpop.permute.xlu0 %1037 }
 0x4e5   : > { %v1045_v57 = vmul.f32 %v1038_v51, %v2331_v55  ;;  %v1099_v55 = vsel %vm2345_vm4, %v1097_v61, 0.0 }
 0x4e6   : > { %v1048_v58 = vsel %vm2326_vm13, %v1046_v50, 0.0  ;;  %v1101_v4 = vsel %vm625_vm0, %v1099_v55, 0.0 }
 0x4e7   : > { %v1050_v59 = vsel %vm625_vm0, %v1048_v58, 0.0  ;;  %v1047_v60 = vsel %vm2322_vm12, %v1045_v57, 0.0 }
 0x4e8   : > { %v1049_v62 = vsel %vm625_vm0, %v1047_v60, 0.0 }
 0x4e9   : > { %v1051_v63 = vadd.f32 %v1050_v59, %v1049_v62 }
 0x4eb   : > { %v1052_v56 = vrot.slane %v1051_v63, 4  ;;  %v1095_v1 = vpop.permute.xlu1 %1094 }
 0x4ec   : > { %v1098_v54 = vmul.f32 %v1095_v1, %v2356_v13 }
 0x4ed   : > { %v1053_v3 = vadd.f32 %v1052_v56, %v1051_v63 }
 0x4ee   : > { %v1100_v53 = vsel %vm2349_vm5, %v1098_v54, 0.0 }
 0x4ef   : > { %v1054_v5 = vrot.slane %v1053_v3, 2  ;;  %v1102_v6 = vsel %vm625_vm0, %v1100_v53, 0.0 }
 0x4f0   : > { %v1103_v8 = vadd.f32 %v1102_v6, %v1101_v4 }
 0x4f1   : > { %v1055_v11 = vadd.f32 %v1054_v5, %v1053_v3 }
 0x4f2   : > { %v1104_v7 = vrot.slane %v1103_v8, 4 }
 0x4f3   : > { %v1056_v12 = vrot.slane %v1055_v11, 1  ;;  %v1123_v19 = vpop.permute.xlu1 %1122 }
 0x4f4   : > { %v1105_v14 = vadd.f32 %v1104_v7, %v1103_v8 }
 0x4f5   : > { %v1057_v9 = vadd.f32 %v1056_v12, %v1055_v11 }
 0x4f6   : > { %v1106_v13 = vrot.slane %v1105_v14, 2 }
 0x4f7   : > { %v1073_v16 = vsel %vm625_vm0, %v1057_v9, %v1071_v15 }
 0x4f8   : > { %v1107_v10 = vadd.f32 %v1106_v13, %v1105_v14  ;;  %1075 = vst.msk [vmem:[#allocation4] sm:$0x1] %vm1074_vm6, %v1073_v16 }
 0x4fa   : > { %v1108_v17 = vrot.slane %v1107_v10, 1 }
 0x4fc   : > { %v1109_v18 = vadd.f32 %v1108_v17, %v1107_v10 }
 0x4fe   : > { %v1125_v20 = vsel %vm625_vm0, %v1109_v18, %v1123_v19 }
 0x4ff   : > { %1126 = vst.msk [vmem:[#allocation4 + $0x1] sm:$0x1] %vm1074_vm6, %v1125_v20 }
 0x506   : > { %v1141_v21 = vld [vmem:[#allocation4] sm:$0xff] }
 0x507   : > { %v1142_v22 = vpack.c.bf16 %v1141_v21, %v1141_v21 }
 0x509   : > { %1478 = vmatmul.msk.bf16.vlgmr.msrb.gmra.mxu1 %vm847_vm3, %v1142_v22 }
 0x586   : > { %v1180_v24 = vpop.f32.mrf.mxu1 }
 0x587   : > { %v1181_v25 = vadd.f32 %v1631_v23, %v1180_v24 }
 0x589   : > { %v1184_v26 = vmax.f32 %v1181_v25, 0.0 }
 0x58b   : > { %v1185_v27 = vpack.c.bf16 %v1184_v26, %v1184_v26 }
 0x58d   : > { %1487 = vmatmul.msk.bf16.vlgmr.msrb.gmra.mxu0 %vm625_vm0, %v1185_v27 }
 0x58e   : > { %v1182_v28 = vpop.f32.mrf.mxu1 }
 0x60a   : > { %v1211_v30 = vpop.f32.mrf.mxu0 }
 0x60b   : > { %v1212_v31 = vadd.f32 %v1632_v29, %v1211_v30 }
 0x60d   : > { %1215 = vst [vmem:[%s587_s28] sm:$0xff] %v1212_v31 }
 0x60e   : > { %1910 = shalt.err (!%p1907_p3)
}
 0x60f   : > { %1533 = dma.vmem_to_hbm [thread:$0]  (%p2144_p4), %s1230_s23, 128, %s1232_s25, %s1217_s24  }
 0x612   : > { %v1213_v32 = vpop.f32.mrf.mxu0 }
 0x613 PF: > { %s2501_s2 = sld [smem:[#allocation28_spill]]  ;;  %p2503_p10 = scmp.ge.s32.totalorder %s1967_s22, 2 }
 0x615   : > { %p1559_p2 = pnand %p2503_p10, %p2148_p7 }
 0x617   : > { %p1560_p1 = pneg %p1559_p2 }
 0x619   : > { %s1243_s27 = sand.u32 1, %s2501_s2  }
 0x61a   : > { %s1244_s16 = scalar_lea.sflag [#allocation10], %s1243_s27 }
 0x61b   : > { %1950 = dma.done.wait (%p1560_p1), %s1244_s16, 128  }
 0x61c   : > { %1952 = vsyncadd (%p1560_p1), %s1244_s16, 4294967168  ;;  %s2504_s22 = sld [smem:[#allocation30_spill]]  ;;  %s2507_s0 = smov %s1959_s21 }
 0x61d   : > { %s2505_s4 = sld [smem:[#allocation29_spill]] }
 0x61e   : > { %s2506_s1 = sld [smem:[#allocation31_spill]] }
 0x622   : > { %p43_p5 = scmp.ge.s32.totalorder %s2504_s22, 4  }
 0x623   : > { %s2508_s21 = smov %s2505_s4 }
 0x624   :  { %45 = sbr.rel (!%p43_p5) target bundleno = 19 (0x13), region = 154 }
 0x629   :  { %1250 = vsyncpa [#allocation9], 1 }
 0x62a   :  { %1252 = vsyncpa [#allocation9 + $0x1], 1 }
 0x62b   :  { %1253 = vsyncpa [#allocation12], 1 }
 0x62c   :  { %1254 = vsyncpa [#allocation15], 1 }
 0x62d   :  { %1255 = vsyncpa [#allocation18], 1 }
 0x62e   :  { %1256 = vsyncpa [#allocation10], 1 }
 0x62f   :  { %1258 = vsyncpa [#allocation10 + $0x1], 1 }

</bundles_post_ra>
